<compile_context>
chip_gen: v6e
topology: v6e:2x2x1
jax: 0.10.0
libtpu: 0.0.40
codegen_flags: <defaults>
</compile_context>

<pallas_src>
import math

import jax
import jax.numpy as jnp
from jax.experimental import pallas as pl
from jax.experimental.pallas import tpu as pltpu


LANES = 128          # vreg lane width (last dim)
SUBLANES = 8         # f32 sublane alignment
BLOCK_ROWS_MAX = 1024  # 1024 x 128 f32 = 512 KiB per tile


def _poly3_kernel(coef_ref, x_ref, o_ref):
    # coef_ref: SMEM (4,) float32  -> a, b, c, d scalars
    # x_ref/o_ref: VMEM (block_rows, LANES) tiles
    a = coef_ref[0]
    b = coef_ref[1]
    c = coef_ref[2]
    d = coef_ref[3]
    x = x_ref[...].astype(jnp.float32)
    # Horner form: a + x*(b + x*(c + x*d))
    y = a + x * (b + x * (c + x * d))
    o_ref[...] = y.astype(o_ref.dtype)


def polynomial3(x, a, b, c, d, *, min_pallas_size=8192):
    """Elementwise a + b*x + c*x^2 + d*x^3 via a Pallas TPU kernel.

    x: any shape (float32 / bfloat16 preferred). a,b,c,d: scalars.
    """
    orig_shape = x.shape
    orig_dtype = x.dtype
    n = x.size

    # Small-N fast path: a pallas_call is pure launch/DMA overhead here.
    if n < min_pallas_size:
        y = a + x * (b + x * (c + x * d))
        return y.astype(orig_dtype)

    # Keep narrow dtypes end-to-end (kernel is HBM-bandwidth bound).
    if orig_dtype in (jnp.float32, jnp.bfloat16):
        compute_dtype = orig_dtype
    else:
        compute_dtype = jnp.float32

    flat = x.reshape(-1).astype(compute_dtype)

    # Pick the block: big (up to 1024 rows) but no bigger than needed.
    rows_needed = -(-n // LANES)
    block_rows = min(BLOCK_ROWS_MAX, -(-rows_needed // SUBLANES) * SUBLANES)
    per_block = block_rows * LANES

    # Only pad the tail when necessary (avoids an extra HBM pass otherwise).
    padded_n = -(-n // per_block) * per_block
    if padded_n != n:
        flat = jnp.pad(flat, (0, padded_n - n))

    rows = padded_n // LANES
    slab = flat.reshape(rows, LANES)

    coefs = jnp.stack([
        jnp.asarray(a, dtype=jnp.float32),
        jnp.asarray(b, dtype=jnp.float32),
        jnp.asarray(c, dtype=jnp.float32),
        jnp.asarray(d, dtype=jnp.float32),
    ])

    grid = (rows // block_rows,)
    out = pl.pallas_call(
        _poly3_kernel,
        out_shape=jax.ShapeDtypeStruct((rows, LANES), compute_dtype),
        grid_spec=pltpu.PrefetchScalarGridSpec(
            num_scalar_prefetch=0,
            grid=grid,
            in_specs=[
                pl.BlockSpec(memory_space=pltpu.SMEM),                 # coefficients
                pl.BlockSpec((block_rows, LANES), lambda i: (i, 0)),   # x tile
            ],
            out_specs=pl.BlockSpec((block_rows, LANES), lambda i: (i, 0)),
        ),
        compiler_params=pltpu.CompilerParams(
            dimension_semantics=("parallel",),
        ),
    )(coefs, slab)

    out_flat = out.reshape(-1)
    if padded_n != n:
        out_flat = out_flat[:n]
    y = out_flat.reshape(orig_shape)
    if y.dtype != orig_dtype:
        y = y.astype(orig_dtype)
    return y


if __name__ == "__main__":
    key = jax.random.PRNGKey(0)
    kx, ka, kb, kc, kd = jax.random.split(key, 5)

    # Deterministic "randn" parameters, matching torch.nn.Parameter(torch.randn(()))
    a = jax.random.normal(ka, (), dtype=jnp.float32)
    b = jax.random.normal(kb, (), dtype=jnp.float32)
    c = jax.random.normal(kc, (), dtype=jnp.float32)
    d = jax.random.normal(kd, (), dtype=jnp.float32)

    # Case 1: 2-D input that exercises the large-tile Pallas path
    # (2048*256 elems -> 4096 rows -> grid of 4 blocks of (1024, 128), no padding).
    x_big = jax.random.normal(kx, (2048, 256), dtype=jnp.float32)
    y_big = jax.block_until_ready(polynomial3(x_big, a, b, c, d))
    ref_big = a + x_big * (b + x_big * (c + x_big * d))
    assert jnp.allclose(y_big, ref_big, atol=1e-5, rtol=1e-5), "big-input mismatch"

    # Case 2: tutorial-sized 1-D input, forced through the Pallas path to
    # exercise the padded-tail handling.
    x_small = jnp.linspace(-math.pi, math.pi, 2000, dtype=jnp.float32)
    y_small = jax.block_until_ready(
        polynomial3(x_small, a, b, c, d, min_pallas_size=0))
    ref_small = a + x_small * (b + x_small * (c + x_small * d))
    assert jnp.allclose(y_small, ref_small, atol=1e-5, rtol=1e-5), "small-input mismatch"

    # Case 3: same small input through the plain-XLA fast path.
    y_fast = jax.block_until_ready(polynomial3(x_small, a, b, c, d))
    assert jnp.allclose(y_fast, ref_small, atol=1e-5, rtol=1e-5), "fast-path mismatch"

    print("KERNEL_OK")
</pallas_src>

<mosaic_0001>
module attributes {stable_mosaic.version = 11 : i64} {
  func.func @_poly3_kernel(%arg0: i32, %arg1: memref<4xf32, #tpu.memory_space<smem>>, %arg2: memref<1024x128xf32, #tpu.memory_space<vmem>>, %arg3: memref<1024x128xf32, #tpu.memory_space<vmem>>) attributes {dimension_semantics = [#tpu.dimension_semantics<parallel>], iteration_bounds = array<i64: 4>, scalar_prefetch = 0 : i64, scratch_operands = 0 : i64, tpu.core_type = #tpu.core_type<tc>, window_params = [{transform_indices = @transform_0, window_bounds = array<i64: 4>}, {transform_indices = @transform_1, window_bounds = array<i64: 1024, 128>}, {transform_indices = @transform_2, window_bounds = array<i64: 1024, 128>}]} {
    %c0 = arith.constant 0 : index
    %0 = memref.load %arg1[%c0] : memref<4xf32, #tpu.memory_space<smem>>
    %c1 = arith.constant 1 : index
    %1 = memref.load %arg1[%c1] : memref<4xf32, #tpu.memory_space<smem>>
    %c2 = arith.constant 2 : index
    %2 = memref.load %arg1[%c2] : memref<4xf32, #tpu.memory_space<smem>>
    %c3 = arith.constant 3 : index
    %3 = memref.load %arg1[%c3] : memref<4xf32, #tpu.memory_space<smem>>
    %c0_0 = arith.constant 0 : index
    %c0_1 = arith.constant 0 : index
    %4 = vector.load %arg2[%c0_0, %c0_1] : memref<1024x128xf32, #tpu.memory_space<vmem>>, vector<1024x128xf32>
    %5 = vector.broadcast %3 : f32 to vector<1024x128xf32>
    %6 = arith.mulf %4, %5 : vector<1024x128xf32>
    %7 = vector.broadcast %2 : f32 to vector<1024x128xf32>
    %8 = arith.addf %7, %6 : vector<1024x128xf32>
    %9 = arith.mulf %4, %8 : vector<1024x128xf32>
    %10 = vector.broadcast %1 : f32 to vector<1024x128xf32>
    %11 = arith.addf %10, %9 : vector<1024x128xf32>
    %12 = arith.mulf %4, %11 : vector<1024x128xf32>
    %13 = vector.broadcast %0 : f32 to vector<1024x128xf32>
    %14 = arith.addf %13, %12 : vector<1024x128xf32>
    %c0_2 = arith.constant 0 : index
    %c0_3 = arith.constant 0 : index
    %15 = vector.load %arg3[%c0_2, %c0_3] : memref<1024x128xf32, #tpu.memory_space<vmem>>, vector<1024x128xf32>
    tpu.vector_store %arg3[%c0_2, %c0_3], %14 {strides = array<i32>} : memref<1024x128xf32, #tpu.memory_space<vmem>>, vector<1024x128xf32>,
    return
  }
  func.func @transform_0(%arg0: i32) -> i32 {
    %c0_i32 = arith.constant 0 : i32
    %c0_i32_0 = arith.constant 0 : i32
    return %c0_i32 : i32
  }
  func.func @transform_1(%arg0: i32) -> (i32, i32) {
    %c0_i32 = arith.constant 0 : i32
    %c0_i32_0 = arith.constant 0 : i32
    return %arg0, %c0_i32 : i32, i32
  }
  func.func @transform_2(%arg0: i32) -> (i32, i32) {
    %c0_i32 = arith.constant 0 : i32
    %c0_i32_0 = arith.constant 0 : i32
    return %arg0, %c0_i32 : i32, i32
  }
}

</mosaic_0001>

<bundles_post_ra>
// kernel: tpu_custom_call.1
= control target key start
LH: loop header
LB: loop body
LE: loop exit
PB: predicated region body
PF: predicated region fallthrough
CT: control target
= control target key end

     0   :  { %7 = vsyncpa [#allocation5], 0  ;;  %s2476_s0 = inlined_call_operand.hbm [shape: f32[4], index: 0, kind: input, shape index: {}]   ;;  %s2477_s1 = inlined_call_operand.hbm [shape: f32[4096,128], index: 1, kind: input, shape index: {}]   ;;  %s2478_s2 = inlined_call_operand.hbm [shape: f32[4096,128], index: 2, kind: output, shape index: {}]  }
   0x1   :  { %8 = vsyncpa [#allocation3], 0 }
   0x2   :  { %10 = vsyncpa [#allocation3 + $0x1], 0 }
   0x3   :  { %11 = vsyncpa [#allocation4], 0 }
   0x4   :  { %13 = vsyncpa [#allocation4 + $0x1], 0  ;;  %s1520_s9 = smov 0   ;;  %s1522_s10 = smov 0  }
   0x5   :  { %s1524_s11 = smov 0   ;;  %s1526_s12 = smov 0  }
   0x6 LB: > { %s1541_s13 = sadd.s32 4294967295, %s1496_s12   ;;  %s1307_s14 = sadd.s32 4294967294, %s1496_s12   ;;  %s1496_s12 = sphi %s1526_s12, %s2498_s12   ;;  %s1492_s11 = sphi %s1524_s11, %s2497_s11   ;;  %s1488_s10 = sphi %s1522_s10, %s2496_s10   ;;  %s1484_s9 = sphi %s1520_s9, %s2495_s9  }
   0x7   : > { %s1545_s15 = sadd.s32 1, %s1496_s12   ;;  %s47_s16 = sadd.s32 1, %s1492_s11 }
   0x8   : > { %s44_s17 = ssub.s32 %s1496_s12, %s1545_s15  ;;  %p54_p0 = scmp.ne.s32.totalorder %s1492_s11, %s1488_s10 }
   0x9   : > { %p45_p1 = scmp.eq.s32.totalorder %s44_s17, 0  ;;  %p55_p2 = scmp.eq.s32.totalorder %s1496_s12, 0 }
   0xa   : > { %p60_p3 = scmp.ne.s32.totalorder %s1488_s10, %s1484_s9  ;;  %p2480_p4 = scmp.eq.s32.totalorder %s1541_s13, 0 }
   0xb   : > { %s1557_s18 = scalar_select %p45_p1, %s1492_s11, %s47_s16  }
   0xc   : > { %p1559_p5 = por %p55_p2, %p54_p0  ;;  %p1565_p6 = por %p2480_p4, %p60_p3 }
   0xd   : > { %p84_p7 = scmp.eq.s32.totalorder %s1541_s13, 3  ;;  %p90_p8 = scmp.eq.s32.totalorder %s1307_s14, 3 }
   0xe   : > { %s2484_s20 = scalar_select %p1565_p6, 1, 0 }
   0xf   : > { %p1308_p9 = scmp.ge.s32.totalorder %s1496_s12, 1  ;;  %p97_p10 = scmp.lt.s32.totalorder %s1496_s12, 5 }
  0x10   : > { %p1572_p11 = por %p84_p7, %p54_p0  ;;  %p1576_p12 = por %p90_p8, %p60_p3 }
  0x11   : > { %p1580_p13 = pnand %p1308_p9, %p97_p10  ;;  %p1349_p2 = scmp.lt.s32.totalorder %s1496_s12, 4 }
  0x12   : > { %s2485_s21 = scalar_select %p1572_p11, 1, 0 }
  0x13   : > { %s2486_s22 = scalar_select %p1576_p12, 1, 0 }
  0x14   : > { %s2487_s23 = scalar_select %p1580_p13, 1, 0 }
  0x15   : > { %p1336_p1 = pneg %p1580_p13  ;;  %s119_s24 = sand.u32 1, %s1492_s11  }
  0x16   : > { %s1326_s25 = sshll.u32 %s1496_s12, 14  ;;  %p1593_p0 = pnand %p1349_p2, %p1559_p5 }
  0x17   : > { %p1337_p6 = pnand %p1336_p1, %p2480_p4  ;;  %s1311_s27 = sshll.u32 %s119_s24, 10 }
  0x18   : > { %s1498_s28 = smov [#allocation2]   ;;  %s1603_s5 = scalar_lea.hbm %s2477_s1, %s1326_s25 }
  0x19   : > { %1339 = dma.hbm_to_smem (!%p1337_p6), %s2476_s0, 16, %s1498_s28, [#allocation5]  }
  0x1a   : > { %s123_s6 = scalar_lea.vmem [#allocation6], %s1311_s27  ;;  %s1607_s8 = scalar_lea.sflag [#allocation3], %s119_s24 }
  0x1b   : > { %s130_s7 = sshll.u32 %s123_s6, 4  ;;  %s1400_s14 = scalar_lea.hbm %s1603_s5, 16384  ;;  %s1605_s7 = int_to_ptr.vmem [resolvable:$true] %s130_s7 }
  0x1c   : > { %p1401_p3 = scmp.ne.s32.totalorder %s1603_s5, %s1400_s14  ;;  %p1402_p5 = pneg %p1593_p0 }
  0x1d   : > { %s1405_s19 = scalar_lea.hbm %s2477_s1, 65536  ;;  %p1406_p8 = scmp.lt.s32.totalorder %s1603_s5, %s2477_s1 }
  0x1e   : > { %p1403_p7 = pnand %p1402_p5, %p1401_p3  ;;  %p1407_p9 = scmp.lt.s32.totalorder %s1405_s19, %s1400_s14 }
  0x20   : > { %p1404_p6 = pneg %p1403_p7  ;;  %p1408_p10 = por %p1407_p9, %p1406_p8 }
  0x22   : > { %p1409_p1 = pnand %p1408_p10, %p1404_p6 }
  0x24   : > { %1412 = shalt.err (!%p1409_p1)
}
  0x25   : > { %s1413_s24 = scalar_lea.vmem %s1605_s7, 16384  ;;  %s1499_s27 = smov [#allocation6]  }
  0x26   : > { %p1414_p2 = scmp.ne.s32.totalorder %s1605_s7, %s1413_s24  ;;  %s1418_s29 = sshll.u32 %s1499_s27, 4  ;;  %s1419_s29 = int_to_ptr.vmem [resolvable:$false] %s1418_s29 }
  0x27   : > { %s1420_s30 = scalar_lea.vmem %s1419_s29, 32768  ;;  %p1421_p7 = scmp.lt.s32.totalorder %s1605_s7, %s1419_s29 }
  0x28   : > { %p1416_p4 = pnand %p1414_p2, %p1402_p5  ;;  %p1422_p12 = scmp.lt.s32.totalorder %s1420_s30, %s1413_s24 }
  0x2a   : > { %p1417_p3 = pneg %p1416_p4  ;;  %p1423_p11 = por %p1422_p12, %p1421_p7 }
  0x2c   : > { %p1424_p13 = pnand %p1423_p11, %p1417_p3 }
  0x2e   : > { %1427 = shalt.err (!%p1424_p13)
}
  0x2f   : > { %s1500_s3 = smov 128   ;;  %s1501_s4 = smov 8  }
  0x30   : > { %1343 = dma.hbm_to_vmem [thread:$0]  (!%p1593_p0), %s1603_s5, 16384, %s1605_s7, %s1607_s8, %s1500_s3, %s1500_s3, %s1501_s4  }
  0x31   : > { %p2489_p5 = scmp.ne.s32.totalorder %s2487_s23, 0 }
  0x32   : > { %p2490_p4 = scmp.eq.s32.totalorder (!%p2489_p5), %s1541_s13, 0 }
  0x33   : > { %142 = sbr.rel (%p2489_p5) target bundleno = 297 (0x129), region = 28 }
  0x38   : > { %1471 = dma.done.wait (%p2490_p4), [#allocation5], 16   ;;  %p2491_p6 = pmov %p2490_p4 }
  0x39   : > { %s1635_s6 = sand.u32 1, %s1488_s10   ;;  %p2492_p11 = scmp.ne.s32.totalorder %s2484_s20, 0 }
  0x3a   : > { %1473 = vsyncadd (%p2491_p6), [#allocation5], 4294967280  ;;  %s1316_s14 = sshll.u32 %s1635_s6, 10  ;;  %s149_s16 = scalar_lea.sflag [#allocation3], %s1635_s6 }
  0x3b   : > { %s1641_s26 = scalar_lea.vmem [#allocation6], %s1316_s14 }
  0x3c   : > { %1475 = dma.done.wait (%p2492_p11), %s149_s16, 16384  }
  0x3d   : > { %1477 = vsyncadd (%p2492_p11), %s149_s16, 4294950912 }
  0x3e   : > { %157 = sfence }
  0x3f   : > { %s176_s23 = sld [smem:[#allocation2]]  ;;  %v180_v0 = vld [vmem:[%s1641_s26] sm:$0xff]  ;;  %v181_v1 = vld [vmem:[%s1641_s26 + $0x8] sm:$0xff]  ;;  %v182_v2 = vld [vmem:[%s1641_s26 + $0x10] sm:$0xff]  ;;  %s1705_s20 = scalar_lea.vmem [#allocation7], %s1316_s14 }
  0x40   : > { %s1318_s5 = sld [smem:[#allocation2 + $0x1]]  ;;  %v183_v3 = vld [vmem:[%s1641_s26 + $0x18] sm:$0xff]  ;;  %v184_v4 = vld [vmem:[%s1641_s26 + $0x20] sm:$0xff]  ;;  %v185_v5 = vld [vmem:[%s1641_s26 + $0x28] sm:$0xff]  ;;  %s1327_s17 = sshll.u32 %s1541_s13, 14 }
  0x41   : > { %s1319_s7 = sld [smem:[#allocation2 + $0x2]]  ;;  %v186_v6 = vld [vmem:[%s1641_s26 + $0x30] sm:$0xff]  ;;  %v187_v7 = vld [vmem:[%s1641_s26 + $0x38] sm:$0xff]  ;;  %v188_v48 = vld [vmem:[%s1641_s26 + $0x40] sm:$0xff]  ;;  %s1222_s19 = sshll.u32 %s1705_s20, 4  ;;  %s2422_s19 = int_to_ptr.vmem [resolvable:$true] %s1222_s19 }
  0x42   : > { %s1320_s8 = sld [smem:[#allocation2 + $0x3]]  ;;  %v189_v49 = vld [vmem:[%s1641_s26 + $0x48] sm:$0xff]  ;;  %v190_v54 = vld [vmem:[%s1641_s26 + $0x50] sm:$0xff]  ;;  %v191_v55 = vld [vmem:[%s1641_s26 + $0x58] sm:$0xff]  ;;  %s2420_s28 = scalar_lea.hbm %s2478_s2, %s1327_s17 }
  0x43   : > { %v192_v56 = vld [vmem:[%s1641_s26 + $0x60] sm:$0xff]  ;;  %v193_v61 = vld [vmem:[%s1641_s26 + $0x68] sm:$0xff]  ;;  %v194_v62 = vld [vmem:[%s1641_s26 + $0x70] sm:$0xff]  ;;  %s1209_s24 = scalar_lea.sflag [#allocation4], %s1635_s6  ;;  %s1428_s27 = scalar_lea.vmem %s2422_s19, 16384 }
  0x44   : > { %v195_v63 = vld [vmem:[%s1641_s26 + $0x78] sm:$0xff]  ;;  %p1429_p12 = scmp.ne.s32.totalorder %s2422_s19, %s1428_s27  ;;  %p2493_p13 = scmp.ne.s32.totalorder %s2485_s21, 0 }
  0x45   : > { %v1661_v11 = vstv %s176_s23  ;;  %s1502_s29 = smov [#allocation7]  }
  0x46   : > { %v1659_v10 = vstv %s1318_s5  ;;  %p1430_p0 = pnand %p1429_p12, %p2493_p13  ;;  %s1432_s30 = sshll.u32 %s1502_s29, 4  ;;  %s1433_s30 = int_to_ptr.vmem [resolvable:$false] %s1432_s30 }
  0x47   : > { %v1657_v9 = vstv %s1319_s7  ;;  %s1434_s3 = scalar_lea.vmem %s1433_s30, 32768  ;;  %p1435_p9 = scmp.lt.s32.totalorder %s2422_s19, %s1433_s30 }
  0x48   : > { %v1655_v8 = vstv %s1320_s8  ;;  %p1431_p8 = pneg %p1430_p0  ;;  %p1436_p10 = scmp.lt.s32.totalorder %s1434_s3, %s1428_s27 }
  0x49   : > { %v309_v12 = vmul.f32 %v1655_v8, %v180_v0  ;;  %v310_v13 = vmul.f32 %v1655_v8, %v181_v1  ;;  %v311_v14 = vmul.f32 %v1655_v8, %v182_v2  ;;  %v312_v15 = vmul.f32 %v1655_v8, %v183_v3 }
  0x4a   : > { %v313_v16 = vmul.f32 %v1655_v8, %v184_v4  ;;  %v314_v17 = vmul.f32 %v1655_v8, %v185_v5  ;;  %v315_v18 = vmul.f32 %v1655_v8, %v186_v6  ;;  %v316_v19 = vmul.f32 %v1655_v8, %v187_v7  ;;  %p1437_p1 = por %p1436_p10, %p1435_p9 }
  0x4b   : > { %v438_v20 = vadd.f32 %v1657_v9, %v309_v12  ;;  %v439_v21 = vadd.f32 %v1657_v9, %v310_v13  ;;  %v440_v22 = vadd.f32 %v1657_v9, %v311_v14  ;;  %v441_v23 = vadd.f32 %v1657_v9, %v312_v15 }
  0x4c   : > { %v442_v24 = vadd.f32 %v1657_v9, %v313_v16  ;;  %v443_v25 = vadd.f32 %v1657_v9, %v314_v17  ;;  %v444_v26 = vadd.f32 %v1657_v9, %v315_v18  ;;  %v445_v27 = vadd.f32 %v1657_v9, %v316_v19  ;;  %p1438_p2 = pnand %p1437_p1, %p1431_p8 }
  0x4d   : > { %v566_v28 = vmul.f32 %v438_v20, %v180_v0  ;;  %v567_v29 = vmul.f32 %v439_v21, %v181_v1  ;;  %v568_v30 = vmul.f32 %v440_v22, %v182_v2  ;;  %v569_v31 = vmul.f32 %v441_v23, %v183_v3 }
  0x4e   : > { %v570_v32 = vmul.f32 %v442_v24, %v184_v4  ;;  %v571_v33 = vmul.f32 %v443_v25, %v185_v5  ;;  %v572_v34 = vmul.f32 %v444_v26, %v186_v6  ;;  %v573_v35 = vmul.f32 %v445_v27, %v187_v7 }
  0x4f   : > { %v695_v36 = vadd.f32 %v1659_v10, %v566_v28  ;;  %v696_v37 = vadd.f32 %v1659_v10, %v567_v29  ;;  %v697_v38 = vadd.f32 %v1659_v10, %v568_v30  ;;  %v698_v39 = vadd.f32 %v1659_v10, %v569_v31 }
  0x50   : > { %v699_v40 = vadd.f32 %v1659_v10, %v570_v32  ;;  %v700_v41 = vadd.f32 %v1659_v10, %v571_v33  ;;  %v701_v42 = vadd.f32 %v1659_v10, %v572_v34  ;;  %v702_v43 = vadd.f32 %v1659_v10, %v573_v35 }
  0x51   : > { %v823_v44 = vmul.f32 %v695_v36, %v180_v0  ;;  %v824_v45 = vmul.f32 %v696_v37, %v181_v1  ;;  %v825_v46 = vmul.f32 %v697_v38, %v182_v2  ;;  %v826_v47 = vmul.f32 %v698_v39, %v183_v3 }
  0x52   : > { %v827_v50 = vmul.f32 %v699_v40, %v184_v4  ;;  %v828_v51 = vmul.f32 %v700_v41, %v185_v5  ;;  %v829_v52 = vmul.f32 %v701_v42, %v186_v6  ;;  %v830_v53 = vmul.f32 %v702_v43, %v187_v7 }
  0x53   : > { %v952_v57 = vadd.f32 %v1661_v11, %v823_v44  ;;  %v953_v58 = vadd.f32 %v1661_v11, %v824_v45  ;;  %v954_v59 = vadd.f32 %v1661_v11, %v825_v46  ;;  %v955_v60 = vadd.f32 %v1661_v11, %v826_v47  ;;  %v196_v44 = vld [vmem:[%s1641_s26 + $0x80] sm:$0xff]  ;;  %v197_v45 = vld [vmem:[%s1641_s26 + $0x88] sm:$0xff] }
  0x54   : > { %v956_v0 = vadd.f32 %v1661_v11, %v827_v50  ;;  %v957_v1 = vadd.f32 %v1661_v11, %v828_v51  ;;  %v958_v2 = vadd.f32 %v1661_v11, %v829_v52  ;;  %v959_v3 = vadd.f32 %v1661_v11, %v830_v53  ;;  %v198_v52 = vld [vmem:[%s1641_s26 + $0x90] sm:$0xff]  ;;  %v199_v53 = vld [vmem:[%s1641_s26 + $0x98] sm:$0xff] }
  0x55   : > { %1080 = vst [vmem:[%s1705_s20] sm:$0xff] %v952_v57  ;;  %1081 = vst [vmem:[%s1705_s20 + $0x8] sm:$0xff] %v953_v58  ;;  %v317_v4 = vmul.f32 %v1655_v8, %v188_v48  ;;  %v318_v5 = vmul.f32 %v1655_v8, %v189_v49  ;;  %v319_v6 = vmul.f32 %v1655_v8, %v190_v54  ;;  %v200_v57 = vld [vmem:[%s1641_s26 + $0xa0] sm:$0xff]  ;;  %v202_v58 = vld [vmem:[%s1641_s26 + $0xb0] sm:$0xff] }
  0x56   : > { %1082 = vst [vmem:[%s1705_s20 + $0x10] sm:$0xff] %v954_v59  ;;  %1083 = vst [vmem:[%s1705_s20 + $0x18] sm:$0xff] %v955_v60  ;;  %v320_v7 = vmul.f32 %v1655_v8, %v191_v55  ;;  %v321_v12 = vmul.f32 %v1655_v8, %v192_v56  ;;  %v322_v13 = vmul.f32 %v1655_v8, %v193_v61  ;;  %v203_v59 = vld [vmem:[%s1641_s26 + $0xb8] sm:$0xff] }
  0x57   : > { %1084 = vst [vmem:[%s1705_s20 + $0x20] sm:$0xff] %v956_v0  ;;  %1085 = vst [vmem:[%s1705_s20 + $0x28] sm:$0xff] %v957_v1  ;;  %v323_v14 = vmul.f32 %v1655_v8, %v194_v62  ;;  %v324_v15 = vmul.f32 %v1655_v8, %v195_v63  ;;  %v446_v16 = vadd.f32 %v1657_v9, %v317_v4 }
  0x58   : > { %1086 = vst [vmem:[%s1705_s20 + $0x30] sm:$0xff] %v958_v2  ;;  %1087 = vst [vmem:[%s1705_s20 + $0x38] sm:$0xff] %v959_v3  ;;  %v447_v17 = vadd.f32 %v1657_v9, %v318_v5  ;;  %v448_v18 = vadd.f32 %v1657_v9, %v319_v6  ;;  %v449_v19 = vadd.f32 %v1657_v9, %v320_v7 }
  0x59   : > { %v450_v20 = vadd.f32 %v1657_v9, %v321_v12  ;;  %v451_v21 = vadd.f32 %v1657_v9, %v322_v13  ;;  %v452_v22 = vadd.f32 %v1657_v9, %v323_v14  ;;  %v453_v23 = vadd.f32 %v1657_v9, %v324_v15 }
  0x5a   : > { %v574_v24 = vmul.f32 %v446_v16, %v188_v48  ;;  %v575_v25 = vmul.f32 %v447_v17, %v189_v49  ;;  %v576_v26 = vmul.f32 %v448_v18, %v190_v54  ;;  %v577_v27 = vmul.f32 %v449_v19, %v191_v55 }
  0x5b   : > { %v578_v28 = vmul.f32 %v450_v20, %v192_v56  ;;  %v579_v29 = vmul.f32 %v451_v21, %v193_v61  ;;  %v580_v30 = vmul.f32 %v452_v22, %v194_v62  ;;  %v581_v31 = vmul.f32 %v453_v23, %v195_v63 }
  0x5c   : > { %v703_v32 = vadd.f32 %v1659_v10, %v574_v24  ;;  %v704_v33 = vadd.f32 %v1659_v10, %v575_v25  ;;  %v705_v34 = vadd.f32 %v1659_v10, %v576_v26  ;;  %v706_v35 = vadd.f32 %v1659_v10, %v577_v27 }
  0x5d   : > { %v707_v36 = vadd.f32 %v1659_v10, %v578_v28  ;;  %v708_v37 = vadd.f32 %v1659_v10, %v579_v29  ;;  %v709_v38 = vadd.f32 %v1659_v10, %v580_v30  ;;  %v710_v39 = vadd.f32 %v1659_v10, %v581_v31 }
  0x5e   : > { %v831_v40 = vmul.f32 %v703_v32, %v188_v48  ;;  %v832_v41 = vmul.f32 %v704_v33, %v189_v49  ;;  %v833_v42 = vmul.f32 %v705_v34, %v190_v54  ;;  %v834_v43 = vmul.f32 %v706_v35, %v191_v55 }
  0x5f   : > { %v835_v46 = vmul.f32 %v707_v36, %v192_v56  ;;  %v836_v47 = vmul.f32 %v708_v37, %v193_v61  ;;  %v837_v50 = vmul.f32 %v709_v38, %v194_v62  ;;  %v838_v51 = vmul.f32 %v710_v39, %v195_v63  ;;  %v201_v56 = vld [vmem:[%s1641_s26 + $0xa8] sm:$0xff] }
  0x60   : > { %v960_v48 = vadd.f32 %v1661_v11, %v831_v40  ;;  %v961_v49 = vadd.f32 %v1661_v11, %v832_v41  ;;  %v962_v54 = vadd.f32 %v1661_v11, %v833_v42  ;;  %v963_v55 = vadd.f32 %v1661_v11, %v834_v43  ;;  %v204_v40 = vld [vmem:[%s1641_s26 + $0xc0] sm:$0xff]  ;;  %v205_v41 = vld [vmem:[%s1641_s26 + $0xc8] sm:$0xff] }
  0x61   : > { %v964_v60 = vadd.f32 %v1661_v11, %v835_v46  ;;  %v965_v61 = vadd.f32 %v1661_v11, %v836_v47  ;;  %v966_v62 = vadd.f32 %v1661_v11, %v837_v50  ;;  %v967_v63 = vadd.f32 %v1661_v11, %v838_v51  ;;  %v206_v50 = vld [vmem:[%s1641_s26 + $0xd0] sm:$0xff]  ;;  %v207_v51 = vld [vmem:[%s1641_s26 + $0xd8] sm:$0xff] }
  0x62   : > { %1088 = vst [vmem:[%s1705_s20 + $0x40] sm:$0xff] %v960_v48  ;;  %1089 = vst [vmem:[%s1705_s20 + $0x48] sm:$0xff] %v961_v49  ;;  %v325_v0 = vmul.f32 %v1655_v8, %v196_v44  ;;  %v326_v1 = vmul.f32 %v1655_v8, %v197_v45  ;;  %v327_v2 = vmul.f32 %v1655_v8, %v198_v52  ;;  %v208_v48 = vld [vmem:[%s1641_s26 + $0xe0] sm:$0xff]  ;;  %v210_v49 = vld [vmem:[%s1641_s26 + $0xf0] sm:$0xff] }
  0x63   : > { %1090 = vst [vmem:[%s1705_s20 + $0x50] sm:$0xff] %v962_v54  ;;  %1091 = vst [vmem:[%s1705_s20 + $0x58] sm:$0xff] %v963_v55  ;;  %v328_v3 = vmul.f32 %v1655_v8, %v199_v53  ;;  %v329_v4 = vmul.f32 %v1655_v8, %v200_v57  ;;  %v330_v5 = vmul.f32 %v1655_v8, %v201_v56  ;;  %v211_v54 = vld [vmem:[%s1641_s26 + $0xf8] sm:$0xff] }
  0x64   : > { %1092 = vst [vmem:[%s1705_s20 + $0x60] sm:$0xff] %v964_v60  ;;  %1093 = vst [vmem:[%s1705_s20 + $0x68] sm:$0xff] %v965_v61  ;;  %v331_v6 = vmul.f32 %v1655_v8, %v202_v58  ;;  %v332_v7 = vmul.f32 %v1655_v8, %v203_v59  ;;  %v454_v12 = vadd.f32 %v1657_v9, %v325_v0 }
  0x65   : > { %1094 = vst [vmem:[%s1705_s20 + $0x70] sm:$0xff] %v966_v62  ;;  %1095 = vst [vmem:[%s1705_s20 + $0x78] sm:$0xff] %v967_v63  ;;  %v455_v13 = vadd.f32 %v1657_v9, %v326_v1  ;;  %v456_v14 = vadd.f32 %v1657_v9, %v327_v2  ;;  %v457_v15 = vadd.f32 %v1657_v9, %v328_v3 }
  0x66   : > { %v458_v16 = vadd.f32 %v1657_v9, %v329_v4  ;;  %v459_v17 = vadd.f32 %v1657_v9, %v330_v5  ;;  %v460_v18 = vadd.f32 %v1657_v9, %v331_v6  ;;  %v461_v19 = vadd.f32 %v1657_v9, %v332_v7 }
  0x67   : > { %v582_v20 = vmul.f32 %v454_v12, %v196_v44  ;;  %v583_v21 = vmul.f32 %v455_v13, %v197_v45  ;;  %v584_v22 = vmul.f32 %v456_v14, %v198_v52  ;;  %v585_v23 = vmul.f32 %v457_v15, %v199_v53 }
  0x68   : > { %v586_v24 = vmul.f32 %v458_v16, %v200_v57  ;;  %v587_v25 = vmul.f32 %v459_v17, %v201_v56  ;;  %v588_v26 = vmul.f32 %v460_v18, %v202_v58  ;;  %v589_v27 = vmul.f32 %v461_v19, %v203_v59 }
  0x69   : > { %v711_v28 = vadd.f32 %v1659_v10, %v582_v20  ;;  %v712_v29 = vadd.f32 %v1659_v10, %v583_v21  ;;  %v713_v30 = vadd.f32 %v1659_v10, %v584_v22  ;;  %v714_v31 = vadd.f32 %v1659_v10, %v585_v23 }
  0x6a   : > { %v715_v32 = vadd.f32 %v1659_v10, %v586_v24  ;;  %v716_v33 = vadd.f32 %v1659_v10, %v587_v25  ;;  %v717_v34 = vadd.f32 %v1659_v10, %v588_v26  ;;  %v718_v35 = vadd.f32 %v1659_v10, %v589_v27 }
  0x6b   : > { %v839_v36 = vmul.f32 %v711_v28, %v196_v44  ;;  %v840_v37 = vmul.f32 %v712_v29, %v197_v45  ;;  %v841_v38 = vmul.f32 %v713_v30, %v198_v52  ;;  %v842_v39 = vmul.f32 %v714_v31, %v199_v53 }
  0x6c   : > { %v843_v42 = vmul.f32 %v715_v32, %v200_v57  ;;  %v844_v43 = vmul.f32 %v716_v33, %v201_v56  ;;  %v845_v46 = vmul.f32 %v717_v34, %v202_v58  ;;  %v846_v47 = vmul.f32 %v718_v35, %v203_v59  ;;  %v209_v57 = vld [vmem:[%s1641_s26 + $0xe8] sm:$0xff] }
  0x6d   : > { %v968_v44 = vadd.f32 %v1661_v11, %v839_v36  ;;  %v969_v45 = vadd.f32 %v1661_v11, %v840_v37  ;;  %v970_v52 = vadd.f32 %v1661_v11, %v841_v38  ;;  %v971_v53 = vadd.f32 %v1661_v11, %v842_v39  ;;  %v212_v36 = vld [vmem:[%s1641_s26 + $0x100] sm:$0xff]  ;;  %v213_v37 = vld [vmem:[%s1641_s26 + $0x108] sm:$0xff] }
  0x6e   : > { %v972_v55 = vadd.f32 %v1661_v11, %v843_v42  ;;  %v973_v56 = vadd.f32 %v1661_v11, %v844_v43  ;;  %v974_v58 = vadd.f32 %v1661_v11, %v845_v46  ;;  %v975_v59 = vadd.f32 %v1661_v11, %v846_v47  ;;  %v214_v46 = vld [vmem:[%s1641_s26 + $0x110] sm:$0xff]  ;;  %v215_v47 = vld [vmem:[%s1641_s26 + $0x118] sm:$0xff] }
  0x6f   : > { %1096 = vst [vmem:[%s1705_s20 + $0x80] sm:$0xff] %v968_v44  ;;  %1097 = vst [vmem:[%s1705_s20 + $0x88] sm:$0xff] %v969_v45  ;;  %v333_v60 = vmul.f32 %v1655_v8, %v204_v40  ;;  %v334_v61 = vmul.f32 %v1655_v8, %v205_v41  ;;  %v335_v62 = vmul.f32 %v1655_v8, %v206_v50  ;;  %v216_v44 = vld [vmem:[%s1641_s26 + $0x120] sm:$0xff]  ;;  %v218_v45 = vld [vmem:[%s1641_s26 + $0x130] sm:$0xff] }
  0x70   : > { %1098 = vst [vmem:[%s1705_s20 + $0x90] sm:$0xff] %v970_v52  ;;  %1099 = vst [vmem:[%s1705_s20 + $0x98] sm:$0xff] %v971_v53  ;;  %v336_v63 = vmul.f32 %v1655_v8, %v207_v51  ;;  %v337_v0 = vmul.f32 %v1655_v8, %v208_v48  ;;  %v338_v1 = vmul.f32 %v1655_v8, %v209_v57  ;;  %v219_v52 = vld [vmem:[%s1641_s26 + $0x138] sm:$0xff] }
  0x71   : > { %1100 = vst [vmem:[%s1705_s20 + $0xa0] sm:$0xff] %v972_v55  ;;  %1101 = vst [vmem:[%s1705_s20 + $0xa8] sm:$0xff] %v973_v56  ;;  %v339_v2 = vmul.f32 %v1655_v8, %v210_v49  ;;  %v340_v3 = vmul.f32 %v1655_v8, %v211_v54  ;;  %v462_v4 = vadd.f32 %v1657_v9, %v333_v60 }
  0x72   : > { %1102 = vst [vmem:[%s1705_s20 + $0xb0] sm:$0xff] %v974_v58  ;;  %1103 = vst [vmem:[%s1705_s20 + $0xb8] sm:$0xff] %v975_v59  ;;  %v463_v5 = vadd.f32 %v1657_v9, %v334_v61  ;;  %v464_v6 = vadd.f32 %v1657_v9, %v335_v62  ;;  %v465_v7 = vadd.f32 %v1657_v9, %v336_v63 }
  0x73   : > { %v466_v12 = vadd.f32 %v1657_v9, %v337_v0  ;;  %v467_v13 = vadd.f32 %v1657_v9, %v338_v1  ;;  %v468_v14 = vadd.f32 %v1657_v9, %v339_v2  ;;  %v469_v15 = vadd.f32 %v1657_v9, %v340_v3 }
  0x74   : > { %v590_v16 = vmul.f32 %v462_v4, %v204_v40  ;;  %v591_v17 = vmul.f32 %v463_v5, %v205_v41  ;;  %v592_v18 = vmul.f32 %v464_v6, %v206_v50  ;;  %v593_v19 = vmul.f32 %v465_v7, %v207_v51 }
  0x75   : > { %v594_v20 = vmul.f32 %v466_v12, %v208_v48  ;;  %v595_v21 = vmul.f32 %v467_v13, %v209_v57  ;;  %v596_v22 = vmul.f32 %v468_v14, %v210_v49  ;;  %v597_v23 = vmul.f32 %v469_v15, %v211_v54 }
  0x76   : > { %v719_v24 = vadd.f32 %v1659_v10, %v590_v16  ;;  %v720_v25 = vadd.f32 %v1659_v10, %v591_v17  ;;  %v721_v26 = vadd.f32 %v1659_v10, %v592_v18  ;;  %v722_v27 = vadd.f32 %v1659_v10, %v593_v19 }
  0x77   : > { %v723_v28 = vadd.f32 %v1659_v10, %v594_v20  ;;  %v724_v29 = vadd.f32 %v1659_v10, %v595_v21  ;;  %v725_v30 = vadd.f32 %v1659_v10, %v596_v22  ;;  %v726_v31 = vadd.f32 %v1659_v10, %v597_v23 }
  0x78   : > { %v847_v32 = vmul.f32 %v719_v24, %v204_v40  ;;  %v848_v33 = vmul.f32 %v720_v25, %v205_v41  ;;  %v849_v34 = vmul.f32 %v721_v26, %v206_v50  ;;  %v850_v35 = vmul.f32 %v722_v27, %v207_v51 }
  0x79   : > { %v851_v38 = vmul.f32 %v723_v28, %v208_v48  ;;  %v852_v39 = vmul.f32 %v724_v29, %v209_v57  ;;  %v853_v42 = vmul.f32 %v725_v30, %v210_v49  ;;  %v854_v43 = vmul.f32 %v726_v31, %v211_v54  ;;  %v217_v48 = vld [vmem:[%s1641_s26 + $0x128] sm:$0xff] }
  0x7a   : > { %v976_v40 = vadd.f32 %v1661_v11, %v847_v32  ;;  %v977_v41 = vadd.f32 %v1661_v11, %v848_v33  ;;  %v978_v50 = vadd.f32 %v1661_v11, %v849_v34  ;;  %v979_v51 = vadd.f32 %v1661_v11, %v850_v35  ;;  %v220_v32 = vld [vmem:[%s1641_s26 + $0x140] sm:$0xff]  ;;  %v221_v33 = vld [vmem:[%s1641_s26 + $0x148] sm:$0xff] }
  0x7b   : > { %v980_v53 = vadd.f32 %v1661_v11, %v851_v38  ;;  %v981_v57 = vadd.f32 %v1661_v11, %v852_v39  ;;  %v982_v49 = vadd.f32 %v1661_v11, %v853_v42  ;;  %v983_v54 = vadd.f32 %v1661_v11, %v854_v43  ;;  %v222_v42 = vld [vmem:[%s1641_s26 + $0x150] sm:$0xff]  ;;  %v223_v43 = vld [vmem:[%s1641_s26 + $0x158] sm:$0xff] }
  0x7c   : > { %1104 = vst [vmem:[%s1705_s20 + $0xc0] sm:$0xff] %v976_v40  ;;  %1105 = vst [vmem:[%s1705_s20 + $0xc8] sm:$0xff] %v977_v41  ;;  %v341_v55 = vmul.f32 %v1655_v8, %v212_v36  ;;  %v342_v56 = vmul.f32 %v1655_v8, %v213_v37  ;;  %v343_v58 = vmul.f32 %v1655_v8, %v214_v46  ;;  %v224_v40 = vld [vmem:[%s1641_s26 + $0x160] sm:$0xff]  ;;  %v226_v41 = vld [vmem:[%s1641_s26 + $0x170] sm:$0xff] }
  0x7d   : > { %1106 = vst [vmem:[%s1705_s20 + $0xd0] sm:$0xff] %v978_v50  ;;  %1107 = vst [vmem:[%s1705_s20 + $0xd8] sm:$0xff] %v979_v51  ;;  %v344_v59 = vmul.f32 %v1655_v8, %v215_v47  ;;  %v345_v60 = vmul.f32 %v1655_v8, %v216_v44  ;;  %v346_v61 = vmul.f32 %v1655_v8, %v217_v48  ;;  %v227_v50 = vld [vmem:[%s1641_s26 + $0x178] sm:$0xff] }
  0x7e   : > { %1108 = vst [vmem:[%s1705_s20 + $0xe0] sm:$0xff] %v980_v53  ;;  %1109 = vst [vmem:[%s1705_s20 + $0xe8] sm:$0xff] %v981_v57  ;;  %v347_v62 = vmul.f32 %v1655_v8, %v218_v45  ;;  %v348_v63 = vmul.f32 %v1655_v8, %v219_v52  ;;  %v470_v0 = vadd.f32 %v1657_v9, %v341_v55 }
  0x7f   : > { %1110 = vst [vmem:[%s1705_s20 + $0xf0] sm:$0xff] %v982_v49  ;;  %1111 = vst [vmem:[%s1705_s20 + $0xf8] sm:$0xff] %v983_v54  ;;  %v471_v1 = vadd.f32 %v1657_v9, %v342_v56  ;;  %v472_v2 = vadd.f32 %v1657_v9, %v343_v58  ;;  %v473_v3 = vadd.f32 %v1657_v9, %v344_v59 }
  0x80   : > { %v474_v4 = vadd.f32 %v1657_v9, %v345_v60  ;;  %v475_v5 = vadd.f32 %v1657_v9, %v346_v61  ;;  %v476_v6 = vadd.f32 %v1657_v9, %v347_v62  ;;  %v477_v7 = vadd.f32 %v1657_v9, %v348_v63 }
  0x81   : > { %v598_v12 = vmul.f32 %v470_v0, %v212_v36  ;;  %v599_v13 = vmul.f32 %v471_v1, %v213_v37  ;;  %v600_v14 = vmul.f32 %v472_v2, %v214_v46  ;;  %v601_v15 = vmul.f32 %v473_v3, %v215_v47 }
  0x82   : > { %v602_v16 = vmul.f32 %v474_v4, %v216_v44  ;;  %v603_v17 = vmul.f32 %v475_v5, %v217_v48  ;;  %v604_v18 = vmul.f32 %v476_v6, %v218_v45  ;;  %v605_v19 = vmul.f32 %v477_v7, %v219_v52 }
  0x83   : > { %v727_v20 = vadd.f32 %v1659_v10, %v598_v12  ;;  %v728_v21 = vadd.f32 %v1659_v10, %v599_v13  ;;  %v729_v22 = vadd.f32 %v1659_v10, %v600_v14  ;;  %v730_v23 = vadd.f32 %v1659_v10, %v601_v15 }
  0x84   : > { %v731_v24 = vadd.f32 %v1659_v10, %v602_v16  ;;  %v732_v25 = vadd.f32 %v1659_v10, %v603_v17  ;;  %v733_v26 = vadd.f32 %v1659_v10, %v604_v18  ;;  %v734_v27 = vadd.f32 %v1659_v10, %v605_v19 }
  0x85   : > { %v855_v28 = vmul.f32 %v727_v20, %v212_v36  ;;  %v856_v29 = vmul.f32 %v728_v21, %v213_v37  ;;  %v857_v30 = vmul.f32 %v729_v22, %v214_v46  ;;  %v858_v31 = vmul.f32 %v730_v23, %v215_v47 }
  0x86   : > { %v859_v34 = vmul.f32 %v731_v24, %v216_v44  ;;  %v860_v35 = vmul.f32 %v732_v25, %v217_v48  ;;  %v861_v38 = vmul.f32 %v733_v26, %v218_v45  ;;  %v862_v39 = vmul.f32 %v734_v27, %v219_v52  ;;  %v225_v44 = vld [vmem:[%s1641_s26 + $0x168] sm:$0xff] }
  0x87   : > { %v984_v36 = vadd.f32 %v1661_v11, %v855_v28  ;;  %v985_v37 = vadd.f32 %v1661_v11, %v856_v29  ;;  %v986_v46 = vadd.f32 %v1661_v11, %v857_v30  ;;  %v987_v47 = vadd.f32 %v1661_v11, %v858_v31  ;;  %v228_v28 = vld [vmem:[%s1641_s26 + $0x180] sm:$0xff]  ;;  %v229_v29 = vld [vmem:[%s1641_s26 + $0x188] sm:$0xff] }
  0x88   : > { %v988_v51 = vadd.f32 %v1661_v11, %v859_v34  ;;  %v989_v48 = vadd.f32 %v1661_v11, %v860_v35  ;;  %v990_v45 = vadd.f32 %v1661_v11, %v861_v38  ;;  %v991_v52 = vadd.f32 %v1661_v11, %v862_v39  ;;  %v230_v38 = vld [vmem:[%s1641_s26 + $0x190] sm:$0xff]  ;;  %v231_v39 = vld [vmem:[%s1641_s26 + $0x198] sm:$0xff] }
  0x89   : > { %1112 = vst [vmem:[%s1705_s20 + $0x100] sm:$0xff] %v984_v36  ;;  %1113 = vst [vmem:[%s1705_s20 + $0x108] sm:$0xff] %v985_v37  ;;  %v349_v53 = vmul.f32 %v1655_v8, %v220_v32  ;;  %v350_v57 = vmul.f32 %v1655_v8, %v221_v33  ;;  %v351_v49 = vmul.f32 %v1655_v8, %v222_v42  ;;  %v232_v36 = vld [vmem:[%s1641_s26 + $0x1a0] sm:$0xff]  ;;  %v234_v37 = vld [vmem:[%s1641_s26 + $0x1b0] sm:$0xff] }
  0x8a   : > { %1114 = vst [vmem:[%s1705_s20 + $0x110] sm:$0xff] %v986_v46  ;;  %1115 = vst [vmem:[%s1705_s20 + $0x118] sm:$0xff] %v987_v47  ;;  %v352_v54 = vmul.f32 %v1655_v8, %v223_v43  ;;  %v353_v55 = vmul.f32 %v1655_v8, %v224_v40  ;;  %v354_v56 = vmul.f32 %v1655_v8, %v225_v44  ;;  %v235_v46 = vld [vmem:[%s1641_s26 + $0x1b8] sm:$0xff] }
  0x8b   : > { %1116 = vst [vmem:[%s1705_s20 + $0x120] sm:$0xff] %v988_v51  ;;  %1117 = vst [vmem:[%s1705_s20 + $0x128] sm:$0xff] %v989_v48  ;;  %v355_v58 = vmul.f32 %v1655_v8, %v226_v41  ;;  %v356_v59 = vmul.f32 %v1655_v8, %v227_v50  ;;  %v478_v60 = vadd.f32 %v1657_v9, %v349_v53 }
  0x8c   : > { %1118 = vst [vmem:[%s1705_s20 + $0x130] sm:$0xff] %v990_v45  ;;  %1119 = vst [vmem:[%s1705_s20 + $0x138] sm:$0xff] %v991_v52  ;;  %v479_v61 = vadd.f32 %v1657_v9, %v350_v57  ;;  %v480_v62 = vadd.f32 %v1657_v9, %v351_v49  ;;  %v481_v63 = vadd.f32 %v1657_v9, %v352_v54 }
  0x8d   : > { %v482_v0 = vadd.f32 %v1657_v9, %v353_v55  ;;  %v483_v1 = vadd.f32 %v1657_v9, %v354_v56  ;;  %v484_v2 = vadd.f32 %v1657_v9, %v355_v58  ;;  %v485_v3 = vadd.f32 %v1657_v9, %v356_v59 }
  0x8e   : > { %v606_v4 = vmul.f32 %v478_v60, %v220_v32  ;;  %v607_v5 = vmul.f32 %v479_v61, %v221_v33  ;;  %v608_v6 = vmul.f32 %v480_v62, %v222_v42  ;;  %v609_v7 = vmul.f32 %v481_v63, %v223_v43 }
  0x8f   : > { %v610_v12 = vmul.f32 %v482_v0, %v224_v40  ;;  %v611_v13 = vmul.f32 %v483_v1, %v225_v44  ;;  %v612_v14 = vmul.f32 %v484_v2, %v226_v41  ;;  %v613_v15 = vmul.f32 %v485_v3, %v227_v50 }
  0x90   : > { %v735_v16 = vadd.f32 %v1659_v10, %v606_v4  ;;  %v736_v17 = vadd.f32 %v1659_v10, %v607_v5  ;;  %v737_v18 = vadd.f32 %v1659_v10, %v608_v6  ;;  %v738_v19 = vadd.f32 %v1659_v10, %v609_v7 }
  0x91   : > { %v739_v20 = vadd.f32 %v1659_v10, %v610_v12  ;;  %v740_v21 = vadd.f32 %v1659_v10, %v611_v13  ;;  %v741_v22 = vadd.f32 %v1659_v10, %v612_v14  ;;  %v742_v23 = vadd.f32 %v1659_v10, %v613_v15 }
  0x92   : > { %v863_v24 = vmul.f32 %v735_v16, %v220_v32  ;;  %v864_v25 = vmul.f32 %v736_v17, %v221_v33  ;;  %v865_v26 = vmul.f32 %v737_v18, %v222_v42  ;;  %v866_v27 = vmul.f32 %v738_v19, %v223_v43 }
  0x93   : > { %v867_v30 = vmul.f32 %v739_v20, %v224_v40  ;;  %v868_v31 = vmul.f32 %v740_v21, %v225_v44  ;;  %v869_v34 = vmul.f32 %v741_v22, %v226_v41  ;;  %v870_v35 = vmul.f32 %v742_v23, %v227_v50  ;;  %v233_v40 = vld [vmem:[%s1641_s26 + $0x1a8] sm:$0xff] }
  0x94   : > { %v992_v32 = vadd.f32 %v1661_v11, %v863_v24  ;;  %v993_v33 = vadd.f32 %v1661_v11, %v864_v25  ;;  %v994_v42 = vadd.f32 %v1661_v11, %v865_v26  ;;  %v995_v43 = vadd.f32 %v1661_v11, %v866_v27  ;;  %v236_v24 = vld [vmem:[%s1641_s26 + $0x1c0] sm:$0xff]  ;;  %v237_v25 = vld [vmem:[%s1641_s26 + $0x1c8] sm:$0xff] }
  0x95   : > { %v996_v47 = vadd.f32 %v1661_v11, %v867_v30  ;;  %v997_v44 = vadd.f32 %v1661_v11, %v868_v31  ;;  %v998_v41 = vadd.f32 %v1661_v11, %v869_v34  ;;  %v999_v50 = vadd.f32 %v1661_v11, %v870_v35  ;;  %v238_v34 = vld [vmem:[%s1641_s26 + $0x1d0] sm:$0xff]  ;;  %v239_v35 = vld [vmem:[%s1641_s26 + $0x1d8] sm:$0xff] }
  0x96   : > { %1120 = vst [vmem:[%s1705_s20 + $0x140] sm:$0xff] %v992_v32  ;;  %1121 = vst [vmem:[%s1705_s20 + $0x148] sm:$0xff] %v993_v33  ;;  %v357_v51 = vmul.f32 %v1655_v8, %v228_v28  ;;  %v358_v48 = vmul.f32 %v1655_v8, %v229_v29  ;;  %v359_v45 = vmul.f32 %v1655_v8, %v230_v38  ;;  %v240_v32 = vld [vmem:[%s1641_s26 + $0x1e0] sm:$0xff]  ;;  %v242_v33 = vld [vmem:[%s1641_s26 + $0x1f0] sm:$0xff] }
  0x97   : > { %1122 = vst [vmem:[%s1705_s20 + $0x150] sm:$0xff] %v994_v42  ;;  %1123 = vst [vmem:[%s1705_s20 + $0x158] sm:$0xff] %v995_v43  ;;  %v360_v52 = vmul.f32 %v1655_v8, %v231_v39  ;;  %v361_v53 = vmul.f32 %v1655_v8, %v232_v36  ;;  %v362_v57 = vmul.f32 %v1655_v8, %v233_v40  ;;  %v243_v42 = vld [vmem:[%s1641_s26 + $0x1f8] sm:$0xff] }
  0x98   : > { %1124 = vst [vmem:[%s1705_s20 + $0x160] sm:$0xff] %v996_v47  ;;  %1125 = vst [vmem:[%s1705_s20 + $0x168] sm:$0xff] %v997_v44  ;;  %v363_v49 = vmul.f32 %v1655_v8, %v234_v37  ;;  %v364_v54 = vmul.f32 %v1655_v8, %v235_v46  ;;  %v486_v55 = vadd.f32 %v1657_v9, %v357_v51 }
  0x99   : > { %1126 = vst [vmem:[%s1705_s20 + $0x170] sm:$0xff] %v998_v41  ;;  %1127 = vst [vmem:[%s1705_s20 + $0x178] sm:$0xff] %v999_v50  ;;  %v487_v56 = vadd.f32 %v1657_v9, %v358_v48  ;;  %v488_v58 = vadd.f32 %v1657_v9, %v359_v45  ;;  %v489_v59 = vadd.f32 %v1657_v9, %v360_v52 }
  0x9a   : > { %v490_v60 = vadd.f32 %v1657_v9, %v361_v53  ;;  %v491_v61 = vadd.f32 %v1657_v9, %v362_v57  ;;  %v492_v62 = vadd.f32 %v1657_v9, %v363_v49  ;;  %v493_v63 = vadd.f32 %v1657_v9, %v364_v54 }
  0x9b   : > { %v614_v0 = vmul.f32 %v486_v55, %v228_v28  ;;  %v615_v1 = vmul.f32 %v487_v56, %v229_v29  ;;  %v616_v2 = vmul.f32 %v488_v58, %v230_v38  ;;  %v617_v3 = vmul.f32 %v489_v59, %v231_v39 }
  0x9c   : > { %v618_v4 = vmul.f32 %v490_v60, %v232_v36  ;;  %v619_v5 = vmul.f32 %v491_v61, %v233_v40  ;;  %v620_v6 = vmul.f32 %v492_v62, %v234_v37  ;;  %v621_v7 = vmul.f32 %v493_v63, %v235_v46 }
  0x9d   : > { %v743_v12 = vadd.f32 %v1659_v10, %v614_v0  ;;  %v744_v13 = vadd.f32 %v1659_v10, %v615_v1  ;;  %v745_v14 = vadd.f32 %v1659_v10, %v616_v2  ;;  %v746_v15 = vadd.f32 %v1659_v10, %v617_v3 }
  0x9e   : > { %v747_v16 = vadd.f32 %v1659_v10, %v618_v4  ;;  %v748_v17 = vadd.f32 %v1659_v10, %v619_v5  ;;  %v749_v18 = vadd.f32 %v1659_v10, %v620_v6  ;;  %v750_v19 = vadd.f32 %v1659_v10, %v621_v7 }
  0x9f   : > { %v871_v20 = vmul.f32 %v743_v12, %v228_v28  ;;  %v872_v21 = vmul.f32 %v744_v13, %v229_v29  ;;  %v873_v22 = vmul.f32 %v745_v14, %v230_v38  ;;  %v874_v23 = vmul.f32 %v746_v15, %v231_v39 }
  0xa0   : > { %v875_v26 = vmul.f32 %v747_v16, %v232_v36  ;;  %v876_v27 = vmul.f32 %v748_v17, %v233_v40  ;;  %v877_v30 = vmul.f32 %v749_v18, %v234_v37  ;;  %v878_v31 = vmul.f32 %v750_v19, %v235_v46  ;;  %v241_v36 = vld [vmem:[%s1641_s26 + $0x1e8] sm:$0xff] }
  0xa1   : > { %v1000_v28 = vadd.f32 %v1661_v11, %v871_v20  ;;  %v1001_v29 = vadd.f32 %v1661_v11, %v872_v21  ;;  %v1002_v38 = vadd.f32 %v1661_v11, %v873_v22  ;;  %v1003_v39 = vadd.f32 %v1661_v11, %v874_v23  ;;  %v244_v20 = vld [vmem:[%s1641_s26 + $0x200] sm:$0xff]  ;;  %v245_v21 = vld [vmem:[%s1641_s26 + $0x208] sm:$0xff] }
  0xa2   : > { %v1004_v43 = vadd.f32 %v1661_v11, %v875_v26  ;;  %v1005_v40 = vadd.f32 %v1661_v11, %v876_v27  ;;  %v1006_v37 = vadd.f32 %v1661_v11, %v877_v30  ;;  %v1007_v46 = vadd.f32 %v1661_v11, %v878_v31  ;;  %v246_v30 = vld [vmem:[%s1641_s26 + $0x210] sm:$0xff]  ;;  %v247_v31 = vld [vmem:[%s1641_s26 + $0x218] sm:$0xff] }
  0xa3   : > { %1128 = vst [vmem:[%s1705_s20 + $0x180] sm:$0xff] %v1000_v28  ;;  %1129 = vst [vmem:[%s1705_s20 + $0x188] sm:$0xff] %v1001_v29  ;;  %v365_v47 = vmul.f32 %v1655_v8, %v236_v24  ;;  %v366_v44 = vmul.f32 %v1655_v8, %v237_v25  ;;  %v367_v41 = vmul.f32 %v1655_v8, %v238_v34  ;;  %v248_v28 = vld [vmem:[%s1641_s26 + $0x220] sm:$0xff]  ;;  %v250_v29 = vld [vmem:[%s1641_s26 + $0x230] sm:$0xff] }
  0xa4   : > { %1130 = vst [vmem:[%s1705_s20 + $0x190] sm:$0xff] %v1002_v38  ;;  %1131 = vst [vmem:[%s1705_s20 + $0x198] sm:$0xff] %v1003_v39  ;;  %v368_v50 = vmul.f32 %v1655_v8, %v239_v35  ;;  %v369_v51 = vmul.f32 %v1655_v8, %v240_v32  ;;  %v370_v48 = vmul.f32 %v1655_v8, %v241_v36  ;;  %v251_v38 = vld [vmem:[%s1641_s26 + $0x238] sm:$0xff] }
  0xa5   : > { %1132 = vst [vmem:[%s1705_s20 + $0x1a0] sm:$0xff] %v1004_v43  ;;  %1133 = vst [vmem:[%s1705_s20 + $0x1a8] sm:$0xff] %v1005_v40  ;;  %v371_v45 = vmul.f32 %v1655_v8, %v242_v33  ;;  %v372_v52 = vmul.f32 %v1655_v8, %v243_v42  ;;  %v494_v53 = vadd.f32 %v1657_v9, %v365_v47 }
  0xa6   : > { %1134 = vst [vmem:[%s1705_s20 + $0x1b0] sm:$0xff] %v1006_v37  ;;  %1135 = vst [vmem:[%s1705_s20 + $0x1b8] sm:$0xff] %v1007_v46  ;;  %v495_v57 = vadd.f32 %v1657_v9, %v366_v44  ;;  %v496_v49 = vadd.f32 %v1657_v9, %v367_v41  ;;  %v497_v54 = vadd.f32 %v1657_v9, %v368_v50 }
  0xa7   : > { %v498_v55 = vadd.f32 %v1657_v9, %v369_v51  ;;  %v499_v56 = vadd.f32 %v1657_v9, %v370_v48  ;;  %v500_v58 = vadd.f32 %v1657_v9, %v371_v45  ;;  %v501_v59 = vadd.f32 %v1657_v9, %v372_v52 }
  0xa8   : > { %v622_v60 = vmul.f32 %v494_v53, %v236_v24  ;;  %v623_v61 = vmul.f32 %v495_v57, %v237_v25  ;;  %v624_v62 = vmul.f32 %v496_v49, %v238_v34  ;;  %v625_v63 = vmul.f32 %v497_v54, %v239_v35 }
  0xa9   : > { %v626_v0 = vmul.f32 %v498_v55, %v240_v32  ;;  %v627_v1 = vmul.f32 %v499_v56, %v241_v36  ;;  %v628_v2 = vmul.f32 %v500_v58, %v242_v33  ;;  %v629_v3 = vmul.f32 %v501_v59, %v243_v42 }
  0xaa   : > { %v751_v4 = vadd.f32 %v1659_v10, %v622_v60  ;;  %v752_v5 = vadd.f32 %v1659_v10, %v623_v61  ;;  %v753_v6 = vadd.f32 %v1659_v10, %v624_v62  ;;  %v754_v7 = vadd.f32 %v1659_v10, %v625_v63 }
  0xab   : > { %v755_v12 = vadd.f32 %v1659_v10, %v626_v0  ;;  %v756_v13 = vadd.f32 %v1659_v10, %v627_v1  ;;  %v757_v14 = vadd.f32 %v1659_v10, %v628_v2  ;;  %v758_v15 = vadd.f32 %v1659_v10, %v629_v3 }
  0xac   : > { %v879_v16 = vmul.f32 %v751_v4, %v236_v24  ;;  %v880_v17 = vmul.f32 %v752_v5, %v237_v25  ;;  %v881_v18 = vmul.f32 %v753_v6, %v238_v34  ;;  %v882_v19 = vmul.f32 %v754_v7, %v239_v35 }
  0xad   : > { %v883_v22 = vmul.f32 %v755_v12, %v240_v32  ;;  %v884_v23 = vmul.f32 %v756_v13, %v241_v36  ;;  %v885_v26 = vmul.f32 %v757_v14, %v242_v33  ;;  %v886_v27 = vmul.f32 %v758_v15, %v243_v42  ;;  %v249_v32 = vld [vmem:[%s1641_s26 + $0x228] sm:$0xff] }
  0xae   : > { %v1008_v24 = vadd.f32 %v1661_v11, %v879_v16  ;;  %v1009_v25 = vadd.f32 %v1661_v11, %v880_v17  ;;  %v1010_v34 = vadd.f32 %v1661_v11, %v881_v18  ;;  %v1011_v35 = vadd.f32 %v1661_v11, %v882_v19  ;;  %v252_v16 = vld [vmem:[%s1641_s26 + $0x240] sm:$0xff]  ;;  %v253_v17 = vld [vmem:[%s1641_s26 + $0x248] sm:$0xff] }
  0xaf   : > { %v1012_v39 = vadd.f32 %v1661_v11, %v883_v22  ;;  %v1013_v36 = vadd.f32 %v1661_v11, %v884_v23  ;;  %v1014_v33 = vadd.f32 %v1661_v11, %v885_v26  ;;  %v1015_v42 = vadd.f32 %v1661_v11, %v886_v27  ;;  %v254_v26 = vld [vmem:[%s1641_s26 + $0x250] sm:$0xff]  ;;  %v255_v27 = vld [vmem:[%s1641_s26 + $0x258] sm:$0xff] }
  0xb0   : > { %1136 = vst [vmem:[%s1705_s20 + $0x1c0] sm:$0xff] %v1008_v24  ;;  %1137 = vst [vmem:[%s1705_s20 + $0x1c8] sm:$0xff] %v1009_v25  ;;  %v373_v43 = vmul.f32 %v1655_v8, %v244_v20  ;;  %v374_v40 = vmul.f32 %v1655_v8, %v245_v21  ;;  %v375_v37 = vmul.f32 %v1655_v8, %v246_v30  ;;  %v256_v24 = vld [vmem:[%s1641_s26 + $0x260] sm:$0xff]  ;;  %v258_v25 = vld [vmem:[%s1641_s26 + $0x270] sm:$0xff] }
  0xb1   : > { %1138 = vst [vmem:[%s1705_s20 + $0x1d0] sm:$0xff] %v1010_v34  ;;  %1139 = vst [vmem:[%s1705_s20 + $0x1d8] sm:$0xff] %v1011_v35  ;;  %v376_v46 = vmul.f32 %v1655_v8, %v247_v31  ;;  %v377_v47 = vmul.f32 %v1655_v8, %v248_v28  ;;  %v378_v44 = vmul.f32 %v1655_v8, %v249_v32  ;;  %v259_v34 = vld [vmem:[%s1641_s26 + $0x278] sm:$0xff] }
  0xb2   : > { %1140 = vst [vmem:[%s1705_s20 + $0x1e0] sm:$0xff] %v1012_v39  ;;  %1141 = vst [vmem:[%s1705_s20 + $0x1e8] sm:$0xff] %v1013_v36  ;;  %v379_v41 = vmul.f32 %v1655_v8, %v250_v29  ;;  %v380_v50 = vmul.f32 %v1655_v8, %v251_v38  ;;  %v502_v51 = vadd.f32 %v1657_v9, %v373_v43 }
  0xb3   : > { %1142 = vst [vmem:[%s1705_s20 + $0x1f0] sm:$0xff] %v1014_v33  ;;  %1143 = vst [vmem:[%s1705_s20 + $0x1f8] sm:$0xff] %v1015_v42  ;;  %v503_v48 = vadd.f32 %v1657_v9, %v374_v40  ;;  %v504_v45 = vadd.f32 %v1657_v9, %v375_v37  ;;  %v505_v52 = vadd.f32 %v1657_v9, %v376_v46 }
  0xb4   : > { %v506_v53 = vadd.f32 %v1657_v9, %v377_v47  ;;  %v507_v57 = vadd.f32 %v1657_v9, %v378_v44  ;;  %v508_v49 = vadd.f32 %v1657_v9, %v379_v41  ;;  %v509_v54 = vadd.f32 %v1657_v9, %v380_v50 }
  0xb5   : > { %v630_v55 = vmul.f32 %v502_v51, %v244_v20  ;;  %v631_v56 = vmul.f32 %v503_v48, %v245_v21  ;;  %v632_v58 = vmul.f32 %v504_v45, %v246_v30  ;;  %v633_v59 = vmul.f32 %v505_v52, %v247_v31 }
  0xb6   : > { %v634_v60 = vmul.f32 %v506_v53, %v248_v28  ;;  %v635_v61 = vmul.f32 %v507_v57, %v249_v32  ;;  %v636_v62 = vmul.f32 %v508_v49, %v250_v29  ;;  %v637_v63 = vmul.f32 %v509_v54, %v251_v38 }
  0xb7   : > { %v759_v0 = vadd.f32 %v1659_v10, %v630_v55  ;;  %v760_v1 = vadd.f32 %v1659_v10, %v631_v56  ;;  %v761_v2 = vadd.f32 %v1659_v10, %v632_v58  ;;  %v762_v3 = vadd.f32 %v1659_v10, %v633_v59 }
  0xb8   : > { %v763_v4 = vadd.f32 %v1659_v10, %v634_v60  ;;  %v764_v5 = vadd.f32 %v1659_v10, %v635_v61  ;;  %v765_v6 = vadd.f32 %v1659_v10, %v636_v62  ;;  %v766_v7 = vadd.f32 %v1659_v10, %v637_v63 }
  0xb9   : > { %v887_v12 = vmul.f32 %v759_v0, %v244_v20  ;;  %v888_v13 = vmul.f32 %v760_v1, %v245_v21  ;;  %v889_v14 = vmul.f32 %v761_v2, %v246_v30  ;;  %v890_v15 = vmul.f32 %v762_v3, %v247_v31 }
  0xba   : > { %v891_v18 = vmul.f32 %v763_v4, %v248_v28  ;;  %v892_v19 = vmul.f32 %v764_v5, %v249_v32  ;;  %v893_v22 = vmul.f32 %v765_v6, %v250_v29  ;;  %v894_v23 = vmul.f32 %v766_v7, %v251_v38  ;;  %v257_v28 = vld [vmem:[%s1641_s26 + $0x268] sm:$0xff] }
  0xbb   : > { %v1016_v20 = vadd.f32 %v1661_v11, %v887_v12  ;;  %v1017_v21 = vadd.f32 %v1661_v11, %v888_v13  ;;  %v1018_v30 = vadd.f32 %v1661_v11, %v889_v14  ;;  %v1019_v31 = vadd.f32 %v1661_v11, %v890_v15  ;;  %v260_v12 = vld [vmem:[%s1641_s26 + $0x280] sm:$0xff]  ;;  %v261_v13 = vld [vmem:[%s1641_s26 + $0x288] sm:$0xff] }
  0xbc   : > { %v1020_v35 = vadd.f32 %v1661_v11, %v891_v18  ;;  %v1021_v32 = vadd.f32 %v1661_v11, %v892_v19  ;;  %v1022_v29 = vadd.f32 %v1661_v11, %v893_v22  ;;  %v1023_v38 = vadd.f32 %v1661_v11, %v894_v23  ;;  %v262_v22 = vld [vmem:[%s1641_s26 + $0x290] sm:$0xff]  ;;  %v263_v23 = vld [vmem:[%s1641_s26 + $0x298] sm:$0xff] }
  0xbd   : > { %1144 = vst [vmem:[%s1705_s20 + $0x200] sm:$0xff] %v1016_v20  ;;  %1145 = vst [vmem:[%s1705_s20 + $0x208] sm:$0xff] %v1017_v21  ;;  %v381_v39 = vmul.f32 %v1655_v8, %v252_v16  ;;  %v382_v36 = vmul.f32 %v1655_v8, %v253_v17  ;;  %v383_v33 = vmul.f32 %v1655_v8, %v254_v26  ;;  %v264_v20 = vld [vmem:[%s1641_s26 + $0x2a0] sm:$0xff]  ;;  %v266_v21 = vld [vmem:[%s1641_s26 + $0x2b0] sm:$0xff] }
  0xbe   : > { %1146 = vst [vmem:[%s1705_s20 + $0x210] sm:$0xff] %v1018_v30  ;;  %1147 = vst [vmem:[%s1705_s20 + $0x218] sm:$0xff] %v1019_v31  ;;  %v384_v42 = vmul.f32 %v1655_v8, %v255_v27  ;;  %v385_v43 = vmul.f32 %v1655_v8, %v256_v24  ;;  %v386_v40 = vmul.f32 %v1655_v8, %v257_v28  ;;  %v267_v30 = vld [vmem:[%s1641_s26 + $0x2b8] sm:$0xff] }
  0xbf   : > { %1148 = vst [vmem:[%s1705_s20 + $0x220] sm:$0xff] %v1020_v35  ;;  %1149 = vst [vmem:[%s1705_s20 + $0x228] sm:$0xff] %v1021_v32  ;;  %v387_v37 = vmul.f32 %v1655_v8, %v258_v25  ;;  %v388_v46 = vmul.f32 %v1655_v8, %v259_v34  ;;  %v510_v47 = vadd.f32 %v1657_v9, %v381_v39 }
  0xc0   : > { %1150 = vst [vmem:[%s1705_s20 + $0x230] sm:$0xff] %v1022_v29  ;;  %1151 = vst [vmem:[%s1705_s20 + $0x238] sm:$0xff] %v1023_v38  ;;  %v511_v44 = vadd.f32 %v1657_v9, %v382_v36  ;;  %v512_v41 = vadd.f32 %v1657_v9, %v383_v33  ;;  %v513_v50 = vadd.f32 %v1657_v9, %v384_v42 }
  0xc1   : > { %v514_v51 = vadd.f32 %v1657_v9, %v385_v43  ;;  %v515_v48 = vadd.f32 %v1657_v9, %v386_v40  ;;  %v516_v45 = vadd.f32 %v1657_v9, %v387_v37  ;;  %v517_v52 = vadd.f32 %v1657_v9, %v388_v46 }
  0xc2   : > { %v638_v53 = vmul.f32 %v510_v47, %v252_v16  ;;  %v639_v57 = vmul.f32 %v511_v44, %v253_v17  ;;  %v640_v49 = vmul.f32 %v512_v41, %v254_v26  ;;  %v641_v54 = vmul.f32 %v513_v50, %v255_v27 }
  0xc3   : > { %v642_v55 = vmul.f32 %v514_v51, %v256_v24  ;;  %v643_v56 = vmul.f32 %v515_v48, %v257_v28  ;;  %v644_v58 = vmul.f32 %v516_v45, %v258_v25  ;;  %v645_v59 = vmul.f32 %v517_v52, %v259_v34 }
  0xc4   : > { %v767_v60 = vadd.f32 %v1659_v10, %v638_v53  ;;  %v768_v61 = vadd.f32 %v1659_v10, %v639_v57  ;;  %v769_v62 = vadd.f32 %v1659_v10, %v640_v49  ;;  %v770_v63 = vadd.f32 %v1659_v10, %v641_v54 }
  0xc5   : > { %v771_v0 = vadd.f32 %v1659_v10, %v642_v55  ;;  %v772_v1 = vadd.f32 %v1659_v10, %v643_v56  ;;  %v773_v2 = vadd.f32 %v1659_v10, %v644_v58  ;;  %v774_v3 = vadd.f32 %v1659_v10, %v645_v59 }
  0xc6   : > { %v895_v4 = vmul.f32 %v767_v60, %v252_v16  ;;  %v896_v5 = vmul.f32 %v768_v61, %v253_v17  ;;  %v897_v6 = vmul.f32 %v769_v62, %v254_v26  ;;  %v898_v7 = vmul.f32 %v770_v63, %v255_v27 }
  0xc7   : > { %v899_v14 = vmul.f32 %v771_v0, %v256_v24  ;;  %v900_v15 = vmul.f32 %v772_v1, %v257_v28  ;;  %v901_v18 = vmul.f32 %v773_v2, %v258_v25  ;;  %v902_v19 = vmul.f32 %v774_v3, %v259_v34  ;;  %v265_v24 = vld [vmem:[%s1641_s26 + $0x2a8] sm:$0xff] }
  0xc8   : > { %v1024_v16 = vadd.f32 %v1661_v11, %v895_v4  ;;  %v1025_v17 = vadd.f32 %v1661_v11, %v896_v5  ;;  %v1026_v26 = vadd.f32 %v1661_v11, %v897_v6  ;;  %v1027_v27 = vadd.f32 %v1661_v11, %v898_v7  ;;  %v268_v4 = vld [vmem:[%s1641_s26 + $0x2c0] sm:$0xff]  ;;  %v269_v5 = vld [vmem:[%s1641_s26 + $0x2c8] sm:$0xff] }
  0xc9   : > { %v1028_v31 = vadd.f32 %v1661_v11, %v899_v14  ;;  %v1029_v28 = vadd.f32 %v1661_v11, %v900_v15  ;;  %v1030_v25 = vadd.f32 %v1661_v11, %v901_v18  ;;  %v1031_v34 = vadd.f32 %v1661_v11, %v902_v19  ;;  %v270_v18 = vld [vmem:[%s1641_s26 + $0x2d0] sm:$0xff]  ;;  %v271_v19 = vld [vmem:[%s1641_s26 + $0x2d8] sm:$0xff] }
  0xca   : > { %1152 = vst [vmem:[%s1705_s20 + $0x240] sm:$0xff] %v1024_v16  ;;  %1153 = vst [vmem:[%s1705_s20 + $0x248] sm:$0xff] %v1025_v17  ;;  %v389_v35 = vmul.f32 %v1655_v8, %v260_v12  ;;  %v390_v32 = vmul.f32 %v1655_v8, %v261_v13  ;;  %v391_v29 = vmul.f32 %v1655_v8, %v262_v22  ;;  %v272_v16 = vld [vmem:[%s1641_s26 + $0x2e0] sm:$0xff]  ;;  %v274_v17 = vld [vmem:[%s1641_s26 + $0x2f0] sm:$0xff] }
  0xcb   : > { %1154 = vst [vmem:[%s1705_s20 + $0x250] sm:$0xff] %v1026_v26  ;;  %1155 = vst [vmem:[%s1705_s20 + $0x258] sm:$0xff] %v1027_v27  ;;  %v392_v38 = vmul.f32 %v1655_v8, %v263_v23  ;;  %v393_v39 = vmul.f32 %v1655_v8, %v264_v20  ;;  %v394_v36 = vmul.f32 %v1655_v8, %v265_v24  ;;  %v275_v26 = vld [vmem:[%s1641_s26 + $0x2f8] sm:$0xff] }
  0xcc   : > { %1156 = vst [vmem:[%s1705_s20 + $0x260] sm:$0xff] %v1028_v31  ;;  %1157 = vst [vmem:[%s1705_s20 + $0x268] sm:$0xff] %v1029_v28  ;;  %v395_v33 = vmul.f32 %v1655_v8, %v266_v21  ;;  %v396_v42 = vmul.f32 %v1655_v8, %v267_v30  ;;  %v518_v43 = vadd.f32 %v1657_v9, %v389_v35 }
  0xcd   : > { %1158 = vst [vmem:[%s1705_s20 + $0x270] sm:$0xff] %v1030_v25  ;;  %1159 = vst [vmem:[%s1705_s20 + $0x278] sm:$0xff] %v1031_v34  ;;  %v519_v40 = vadd.f32 %v1657_v9, %v390_v32  ;;  %v520_v37 = vadd.f32 %v1657_v9, %v391_v29  ;;  %v521_v46 = vadd.f32 %v1657_v9, %v392_v38 }
  0xce   : > { %v522_v47 = vadd.f32 %v1657_v9, %v393_v39  ;;  %v523_v44 = vadd.f32 %v1657_v9, %v394_v36  ;;  %v524_v41 = vadd.f32 %v1657_v9, %v395_v33  ;;  %v525_v50 = vadd.f32 %v1657_v9, %v396_v42 }
  0xcf   : > { %v646_v51 = vmul.f32 %v518_v43, %v260_v12  ;;  %v647_v48 = vmul.f32 %v519_v40, %v261_v13  ;;  %v648_v45 = vmul.f32 %v520_v37, %v262_v22  ;;  %v649_v52 = vmul.f32 %v521_v46, %v263_v23 }
  0xd0   : > { %v650_v53 = vmul.f32 %v522_v47, %v264_v20  ;;  %v651_v57 = vmul.f32 %v523_v44, %v265_v24  ;;  %v652_v49 = vmul.f32 %v524_v41, %v266_v21  ;;  %v653_v54 = vmul.f32 %v525_v50, %v267_v30 }
  0xd1   : > { %v775_v55 = vadd.f32 %v1659_v10, %v646_v51  ;;  %v776_v56 = vadd.f32 %v1659_v10, %v647_v48  ;;  %v777_v58 = vadd.f32 %v1659_v10, %v648_v45  ;;  %v778_v59 = vadd.f32 %v1659_v10, %v649_v52 }
  0xd2   : > { %v779_v60 = vadd.f32 %v1659_v10, %v650_v53  ;;  %v780_v61 = vadd.f32 %v1659_v10, %v651_v57  ;;  %v781_v62 = vadd.f32 %v1659_v10, %v652_v49  ;;  %v782_v63 = vadd.f32 %v1659_v10, %v653_v54 }
  0xd3   : > { %v903_v0 = vmul.f32 %v775_v55, %v260_v12  ;;  %v904_v1 = vmul.f32 %v776_v56, %v261_v13  ;;  %v905_v2 = vmul.f32 %v777_v58, %v262_v22  ;;  %v906_v3 = vmul.f32 %v778_v59, %v263_v23 }
  0xd4   : > { %v907_v6 = vmul.f32 %v779_v60, %v264_v20  ;;  %v908_v7 = vmul.f32 %v780_v61, %v265_v24  ;;  %v909_v14 = vmul.f32 %v781_v62, %v266_v21  ;;  %v910_v15 = vmul.f32 %v782_v63, %v267_v30  ;;  %v273_v20 = vld [vmem:[%s1641_s26 + $0x2e8] sm:$0xff] }
  0xd5   : > { %v1032_v12 = vadd.f32 %v1661_v11, %v903_v0  ;;  %v1033_v13 = vadd.f32 %v1661_v11, %v904_v1  ;;  %v1034_v22 = vadd.f32 %v1661_v11, %v905_v2  ;;  %v1035_v23 = vadd.f32 %v1661_v11, %v906_v3  ;;  %v276_v0 = vld [vmem:[%s1641_s26 + $0x300] sm:$0xff]  ;;  %v277_v1 = vld [vmem:[%s1641_s26 + $0x308] sm:$0xff] }
  0xd6   : > { %v1036_v27 = vadd.f32 %v1661_v11, %v907_v6  ;;  %v1037_v24 = vadd.f32 %v1661_v11, %v908_v7  ;;  %v1038_v21 = vadd.f32 %v1661_v11, %v909_v14  ;;  %v1039_v30 = vadd.f32 %v1661_v11, %v910_v15  ;;  %v278_v14 = vld [vmem:[%s1641_s26 + $0x310] sm:$0xff]  ;;  %v279_v15 = vld [vmem:[%s1641_s26 + $0x318] sm:$0xff] }
  0xd7   : > { %1160 = vst [vmem:[%s1705_s20 + $0x280] sm:$0xff] %v1032_v12  ;;  %1161 = vst [vmem:[%s1705_s20 + $0x288] sm:$0xff] %v1033_v13  ;;  %v397_v31 = vmul.f32 %v1655_v8, %v268_v4  ;;  %v398_v28 = vmul.f32 %v1655_v8, %v269_v5  ;;  %v399_v25 = vmul.f32 %v1655_v8, %v270_v18  ;;  %v280_v12 = vld [vmem:[%s1641_s26 + $0x320] sm:$0xff]  ;;  %v282_v13 = vld [vmem:[%s1641_s26 + $0x330] sm:$0xff] }
  0xd8   : > { %1162 = vst [vmem:[%s1705_s20 + $0x290] sm:$0xff] %v1034_v22  ;;  %1163 = vst [vmem:[%s1705_s20 + $0x298] sm:$0xff] %v1035_v23  ;;  %v400_v34 = vmul.f32 %v1655_v8, %v271_v19  ;;  %v401_v35 = vmul.f32 %v1655_v8, %v272_v16  ;;  %v402_v32 = vmul.f32 %v1655_v8, %v273_v20  ;;  %v283_v22 = vld [vmem:[%s1641_s26 + $0x338] sm:$0xff] }
  0xd9   : > { %1164 = vst [vmem:[%s1705_s20 + $0x2a0] sm:$0xff] %v1036_v27  ;;  %1165 = vst [vmem:[%s1705_s20 + $0x2a8] sm:$0xff] %v1037_v24  ;;  %v403_v29 = vmul.f32 %v1655_v8, %v274_v17  ;;  %v404_v38 = vmul.f32 %v1655_v8, %v275_v26  ;;  %v526_v39 = vadd.f32 %v1657_v9, %v397_v31 }
  0xda   : > { %1166 = vst [vmem:[%s1705_s20 + $0x2b0] sm:$0xff] %v1038_v21  ;;  %1167 = vst [vmem:[%s1705_s20 + $0x2b8] sm:$0xff] %v1039_v30  ;;  %v527_v36 = vadd.f32 %v1657_v9, %v398_v28  ;;  %v528_v33 = vadd.f32 %v1657_v9, %v399_v25  ;;  %v529_v42 = vadd.f32 %v1657_v9, %v400_v34 }
  0xdb   : > { %v530_v43 = vadd.f32 %v1657_v9, %v401_v35  ;;  %v531_v40 = vadd.f32 %v1657_v9, %v402_v32  ;;  %v532_v37 = vadd.f32 %v1657_v9, %v403_v29  ;;  %v533_v46 = vadd.f32 %v1657_v9, %v404_v38 }
  0xdc   : > { %v654_v47 = vmul.f32 %v526_v39, %v268_v4  ;;  %v655_v44 = vmul.f32 %v527_v36, %v269_v5  ;;  %v656_v41 = vmul.f32 %v528_v33, %v270_v18  ;;  %v657_v50 = vmul.f32 %v529_v42, %v271_v19 }
  0xdd   : > { %v658_v51 = vmul.f32 %v530_v43, %v272_v16  ;;  %v659_v48 = vmul.f32 %v531_v40, %v273_v20  ;;  %v660_v45 = vmul.f32 %v532_v37, %v274_v17  ;;  %v661_v52 = vmul.f32 %v533_v46, %v275_v26 }
  0xde   : > { %v783_v53 = vadd.f32 %v1659_v10, %v654_v47  ;;  %v784_v57 = vadd.f32 %v1659_v10, %v655_v44  ;;  %v785_v49 = vadd.f32 %v1659_v10, %v656_v41  ;;  %v786_v54 = vadd.f32 %v1659_v10, %v657_v50 }
  0xdf   : > { %v787_v55 = vadd.f32 %v1659_v10, %v658_v51  ;;  %v788_v56 = vadd.f32 %v1659_v10, %v659_v48  ;;  %v789_v58 = vadd.f32 %v1659_v10, %v660_v45  ;;  %v790_v59 = vadd.f32 %v1659_v10, %v661_v52 }
  0xe0   : > { %v911_v60 = vmul.f32 %v783_v53, %v268_v4  ;;  %v912_v61 = vmul.f32 %v784_v57, %v269_v5  ;;  %v913_v62 = vmul.f32 %v785_v49, %v270_v18  ;;  %v914_v63 = vmul.f32 %v786_v54, %v271_v19 }
  0xe1   : > { %v915_v2 = vmul.f32 %v787_v55, %v272_v16  ;;  %v916_v3 = vmul.f32 %v788_v56, %v273_v20  ;;  %v917_v6 = vmul.f32 %v789_v58, %v274_v17  ;;  %v918_v7 = vmul.f32 %v790_v59, %v275_v26  ;;  %v281_v16 = vld [vmem:[%s1641_s26 + $0x328] sm:$0xff] }
  0xe2   : > { %v1040_v4 = vadd.f32 %v1661_v11, %v911_v60  ;;  %v1041_v5 = vadd.f32 %v1661_v11, %v912_v61  ;;  %v1042_v18 = vadd.f32 %v1661_v11, %v913_v62  ;;  %v1043_v19 = vadd.f32 %v1661_v11, %v914_v63  ;;  %v284_v60 = vld [vmem:[%s1641_s26 + $0x340] sm:$0xff]  ;;  %v285_v61 = vld [vmem:[%s1641_s26 + $0x348] sm:$0xff] }
  0xe3   : > { %v1044_v23 = vadd.f32 %v1661_v11, %v915_v2  ;;  %v1045_v20 = vadd.f32 %v1661_v11, %v916_v3  ;;  %v1046_v17 = vadd.f32 %v1661_v11, %v917_v6  ;;  %v1047_v26 = vadd.f32 %v1661_v11, %v918_v7  ;;  %v286_v6 = vld [vmem:[%s1641_s26 + $0x350] sm:$0xff]  ;;  %v287_v7 = vld [vmem:[%s1641_s26 + $0x358] sm:$0xff] }
  0xe4   : > { %1168 = vst [vmem:[%s1705_s20 + $0x2c0] sm:$0xff] %v1040_v4  ;;  %1169 = vst [vmem:[%s1705_s20 + $0x2c8] sm:$0xff] %v1041_v5  ;;  %v405_v27 = vmul.f32 %v1655_v8, %v276_v0  ;;  %v406_v24 = vmul.f32 %v1655_v8, %v277_v1  ;;  %v407_v21 = vmul.f32 %v1655_v8, %v278_v14  ;;  %v288_v4 = vld [vmem:[%s1641_s26 + $0x360] sm:$0xff]  ;;  %v290_v5 = vld [vmem:[%s1641_s26 + $0x370] sm:$0xff] }
  0xe5   : > { %1170 = vst [vmem:[%s1705_s20 + $0x2d0] sm:$0xff] %v1042_v18  ;;  %1171 = vst [vmem:[%s1705_s20 + $0x2d8] sm:$0xff] %v1043_v19  ;;  %v408_v30 = vmul.f32 %v1655_v8, %v279_v15  ;;  %v409_v31 = vmul.f32 %v1655_v8, %v280_v12  ;;  %v410_v28 = vmul.f32 %v1655_v8, %v281_v16  ;;  %v291_v18 = vld [vmem:[%s1641_s26 + $0x378] sm:$0xff] }
  0xe6   : > { %1172 = vst [vmem:[%s1705_s20 + $0x2e0] sm:$0xff] %v1044_v23  ;;  %1173 = vst [vmem:[%s1705_s20 + $0x2e8] sm:$0xff] %v1045_v20  ;;  %v411_v25 = vmul.f32 %v1655_v8, %v282_v13  ;;  %v412_v34 = vmul.f32 %v1655_v8, %v283_v22  ;;  %v534_v35 = vadd.f32 %v1657_v9, %v405_v27 }
  0xe7   : > { %1174 = vst [vmem:[%s1705_s20 + $0x2f0] sm:$0xff] %v1046_v17  ;;  %1175 = vst [vmem:[%s1705_s20 + $0x2f8] sm:$0xff] %v1047_v26  ;;  %v535_v32 = vadd.f32 %v1657_v9, %v406_v24  ;;  %v536_v29 = vadd.f32 %v1657_v9, %v407_v21  ;;  %v537_v38 = vadd.f32 %v1657_v9, %v408_v30 }
  0xe8   : > { %v538_v39 = vadd.f32 %v1657_v9, %v409_v31  ;;  %v539_v36 = vadd.f32 %v1657_v9, %v410_v28  ;;  %v540_v33 = vadd.f32 %v1657_v9, %v411_v25  ;;  %v541_v42 = vadd.f32 %v1657_v9, %v412_v34 }
  0xe9   : > { %v662_v43 = vmul.f32 %v534_v35, %v276_v0  ;;  %v663_v40 = vmul.f32 %v535_v32, %v277_v1  ;;  %v664_v37 = vmul.f32 %v536_v29, %v278_v14  ;;  %v665_v46 = vmul.f32 %v537_v38, %v279_v15 }
  0xea   : > { %v666_v47 = vmul.f32 %v538_v39, %v280_v12  ;;  %v667_v44 = vmul.f32 %v539_v36, %v281_v16  ;;  %v668_v41 = vmul.f32 %v540_v33, %v282_v13  ;;  %v669_v50 = vmul.f32 %v541_v42, %v283_v22 }
  0xeb   : > { %v791_v51 = vadd.f32 %v1659_v10, %v662_v43  ;;  %v792_v48 = vadd.f32 %v1659_v10, %v663_v40  ;;  %v793_v45 = vadd.f32 %v1659_v10, %v664_v37  ;;  %v794_v52 = vadd.f32 %v1659_v10, %v665_v46 }
  0xec   : > { %v795_v53 = vadd.f32 %v1659_v10, %v666_v47  ;;  %v796_v57 = vadd.f32 %v1659_v10, %v667_v44  ;;  %v797_v49 = vadd.f32 %v1659_v10, %v668_v41  ;;  %v798_v54 = vadd.f32 %v1659_v10, %v669_v50 }
  0xed   : > { %v919_v55 = vmul.f32 %v791_v51, %v276_v0  ;;  %v920_v56 = vmul.f32 %v792_v48, %v277_v1  ;;  %v921_v58 = vmul.f32 %v793_v45, %v278_v14  ;;  %v922_v59 = vmul.f32 %v794_v52, %v279_v15 }
  0xee   : > { %v923_v62 = vmul.f32 %v795_v53, %v280_v12  ;;  %v924_v63 = vmul.f32 %v796_v57, %v281_v16  ;;  %v925_v2 = vmul.f32 %v797_v49, %v282_v13  ;;  %v926_v3 = vmul.f32 %v798_v54, %v283_v22  ;;  %v289_v12 = vld [vmem:[%s1641_s26 + $0x368] sm:$0xff] }
  0xef   : > { %v1048_v0 = vadd.f32 %v1661_v11, %v919_v55  ;;  %v1049_v1 = vadd.f32 %v1661_v11, %v920_v56  ;;  %v1050_v14 = vadd.f32 %v1661_v11, %v921_v58  ;;  %v1051_v15 = vadd.f32 %v1661_v11, %v922_v59  ;;  %v292_v55 = vld [vmem:[%s1641_s26 + $0x380] sm:$0xff]  ;;  %v293_v56 = vld [vmem:[%s1641_s26 + $0x388] sm:$0xff] }
  0xf0   : > { %v1052_v19 = vadd.f32 %v1661_v11, %v923_v62  ;;  %v1053_v16 = vadd.f32 %v1661_v11, %v924_v63  ;;  %v1054_v13 = vadd.f32 %v1661_v11, %v925_v2  ;;  %v1055_v22 = vadd.f32 %v1661_v11, %v926_v3  ;;  %v294_v2 = vld [vmem:[%s1641_s26 + $0x390] sm:$0xff]  ;;  %v295_v3 = vld [vmem:[%s1641_s26 + $0x398] sm:$0xff] }
  0xf1   : > { %1176 = vst [vmem:[%s1705_s20 + $0x300] sm:$0xff] %v1048_v0  ;;  %1177 = vst [vmem:[%s1705_s20 + $0x308] sm:$0xff] %v1049_v1  ;;  %v413_v23 = vmul.f32 %v1655_v8, %v284_v60  ;;  %v414_v20 = vmul.f32 %v1655_v8, %v285_v61  ;;  %v415_v17 = vmul.f32 %v1655_v8, %v286_v6  ;;  %v296_v0 = vld [vmem:[%s1641_s26 + $0x3a0] sm:$0xff]  ;;  %v298_v1 = vld [vmem:[%s1641_s26 + $0x3b0] sm:$0xff] }
  0xf2   : > { %1178 = vst [vmem:[%s1705_s20 + $0x310] sm:$0xff] %v1050_v14  ;;  %1179 = vst [vmem:[%s1705_s20 + $0x318] sm:$0xff] %v1051_v15  ;;  %v416_v26 = vmul.f32 %v1655_v8, %v287_v7  ;;  %v417_v27 = vmul.f32 %v1655_v8, %v288_v4  ;;  %v418_v24 = vmul.f32 %v1655_v8, %v289_v12  ;;  %v299_v14 = vld [vmem:[%s1641_s26 + $0x3b8] sm:$0xff] }
  0xf3   : > { %1180 = vst [vmem:[%s1705_s20 + $0x320] sm:$0xff] %v1052_v19  ;;  %1181 = vst [vmem:[%s1705_s20 + $0x328] sm:$0xff] %v1053_v16  ;;  %v419_v21 = vmul.f32 %v1655_v8, %v290_v5  ;;  %v420_v30 = vmul.f32 %v1655_v8, %v291_v18  ;;  %v542_v31 = vadd.f32 %v1657_v9, %v413_v23 }
  0xf4   : > { %1182 = vst [vmem:[%s1705_s20 + $0x330] sm:$0xff] %v1054_v13  ;;  %1183 = vst [vmem:[%s1705_s20 + $0x338] sm:$0xff] %v1055_v22  ;;  %v543_v28 = vadd.f32 %v1657_v9, %v414_v20  ;;  %v544_v25 = vadd.f32 %v1657_v9, %v415_v17  ;;  %v545_v34 = vadd.f32 %v1657_v9, %v416_v26 }
  0xf5   : > { %v546_v35 = vadd.f32 %v1657_v9, %v417_v27  ;;  %v547_v32 = vadd.f32 %v1657_v9, %v418_v24  ;;  %v548_v29 = vadd.f32 %v1657_v9, %v419_v21  ;;  %v549_v38 = vadd.f32 %v1657_v9, %v420_v30 }
  0xf6   : > { %v670_v39 = vmul.f32 %v542_v31, %v284_v60  ;;  %v671_v36 = vmul.f32 %v543_v28, %v285_v61  ;;  %v672_v33 = vmul.f32 %v544_v25, %v286_v6  ;;  %v673_v42 = vmul.f32 %v545_v34, %v287_v7 }
  0xf7   : > { %v674_v43 = vmul.f32 %v546_v35, %v288_v4  ;;  %v675_v40 = vmul.f32 %v547_v32, %v289_v12  ;;  %v676_v37 = vmul.f32 %v548_v29, %v290_v5  ;;  %v677_v46 = vmul.f32 %v549_v38, %v291_v18 }
  0xf8   : > { %v799_v47 = vadd.f32 %v1659_v10, %v670_v39  ;;  %v800_v44 = vadd.f32 %v1659_v10, %v671_v36  ;;  %v801_v41 = vadd.f32 %v1659_v10, %v672_v33  ;;  %v802_v50 = vadd.f32 %v1659_v10, %v673_v42 }
  0xf9   : > { %v803_v51 = vadd.f32 %v1659_v10, %v674_v43  ;;  %v804_v48 = vadd.f32 %v1659_v10, %v675_v40  ;;  %v805_v45 = vadd.f32 %v1659_v10, %v676_v37  ;;  %v806_v52 = vadd.f32 %v1659_v10, %v677_v46 }
  0xfa   : > { %v927_v53 = vmul.f32 %v799_v47, %v284_v60  ;;  %v928_v57 = vmul.f32 %v800_v44, %v285_v61  ;;  %v929_v49 = vmul.f32 %v801_v41, %v286_v6  ;;  %v930_v54 = vmul.f32 %v802_v50, %v287_v7 }
  0xfb   : > { %v931_v58 = vmul.f32 %v803_v51, %v288_v4  ;;  %v932_v59 = vmul.f32 %v804_v48, %v289_v12  ;;  %v933_v62 = vmul.f32 %v805_v45, %v290_v5  ;;  %v934_v63 = vmul.f32 %v806_v52, %v291_v18  ;;  %v297_v4 = vld [vmem:[%s1641_s26 + $0x3a8] sm:$0xff] }
  0xfc   : > { %v1056_v60 = vadd.f32 %v1661_v11, %v927_v53  ;;  %v1057_v61 = vadd.f32 %v1661_v11, %v928_v57  ;;  %v1058_v6 = vadd.f32 %v1661_v11, %v929_v49  ;;  %v1059_v7 = vadd.f32 %v1661_v11, %v930_v54  ;;  %v300_v53 = vld [vmem:[%s1641_s26 + $0x3c0] sm:$0xff]  ;;  %v301_v57 = vld [vmem:[%s1641_s26 + $0x3c8] sm:$0xff] }
  0xfd   : > { %v1060_v15 = vadd.f32 %v1661_v11, %v931_v58  ;;  %v1061_v12 = vadd.f32 %v1661_v11, %v932_v59  ;;  %v1062_v5 = vadd.f32 %v1661_v11, %v933_v62  ;;  %v1063_v18 = vadd.f32 %v1661_v11, %v934_v63  ;;  %v302_v62 = vld [vmem:[%s1641_s26 + $0x3d0] sm:$0xff]  ;;  %v303_v63 = vld [vmem:[%s1641_s26 + $0x3d8] sm:$0xff] }
  0xfe   : > { %1184 = vst [vmem:[%s1705_s20 + $0x340] sm:$0xff] %v1056_v60  ;;  %1185 = vst [vmem:[%s1705_s20 + $0x348] sm:$0xff] %v1057_v61  ;;  %v421_v19 = vmul.f32 %v1655_v8, %v292_v55  ;;  %v422_v16 = vmul.f32 %v1655_v8, %v293_v56  ;;  %v423_v13 = vmul.f32 %v1655_v8, %v294_v2  ;;  %v304_v60 = vld [vmem:[%s1641_s26 + $0x3e0] sm:$0xff]  ;;  %v306_v61 = vld [vmem:[%s1641_s26 + $0x3f0] sm:$0xff] }
  0xff   : > { %1186 = vst [vmem:[%s1705_s20 + $0x350] sm:$0xff] %v1058_v6  ;;  %1187 = vst [vmem:[%s1705_s20 + $0x358] sm:$0xff] %v1059_v7  ;;  %v424_v22 = vmul.f32 %v1655_v8, %v295_v3  ;;  %v425_v23 = vmul.f32 %v1655_v8, %v296_v0  ;;  %v426_v20 = vmul.f32 %v1655_v8, %v297_v4  ;;  %v307_v6 = vld [vmem:[%s1641_s26 + $0x3f8] sm:$0xff] }
 0x100   : > { %1188 = vst [vmem:[%s1705_s20 + $0x360] sm:$0xff] %v1060_v15  ;;  %1189 = vst [vmem:[%s1705_s20 + $0x368] sm:$0xff] %v1061_v12  ;;  %v427_v17 = vmul.f32 %v1655_v8, %v298_v1  ;;  %v428_v26 = vmul.f32 %v1655_v8, %v299_v14  ;;  %v550_v27 = vadd.f32 %v1657_v9, %v421_v19 }
 0x101   : > { %1190 = vst [vmem:[%s1705_s20 + $0x370] sm:$0xff] %v1062_v5  ;;  %1191 = vst [vmem:[%s1705_s20 + $0x378] sm:$0xff] %v1063_v18  ;;  %v551_v24 = vadd.f32 %v1657_v9, %v422_v16  ;;  %v552_v21 = vadd.f32 %v1657_v9, %v423_v13  ;;  %v553_v30 = vadd.f32 %v1657_v9, %v424_v22 }
 0x102   : > { %v554_v31 = vadd.f32 %v1657_v9, %v425_v23  ;;  %v555_v28 = vadd.f32 %v1657_v9, %v426_v20  ;;  %v556_v25 = vadd.f32 %v1657_v9, %v427_v17  ;;  %v557_v34 = vadd.f32 %v1657_v9, %v428_v26 }
 0x103   : > { %v678_v35 = vmul.f32 %v550_v27, %v292_v55  ;;  %v679_v32 = vmul.f32 %v551_v24, %v293_v56  ;;  %v680_v29 = vmul.f32 %v552_v21, %v294_v2  ;;  %v681_v38 = vmul.f32 %v553_v30, %v295_v3 }
 0x104   : > { %v682_v39 = vmul.f32 %v554_v31, %v296_v0  ;;  %v683_v36 = vmul.f32 %v555_v28, %v297_v4  ;;  %v684_v33 = vmul.f32 %v556_v25, %v298_v1  ;;  %v685_v42 = vmul.f32 %v557_v34, %v299_v14 }
 0x105   : > { %v807_v43 = vadd.f32 %v1659_v10, %v678_v35  ;;  %v808_v40 = vadd.f32 %v1659_v10, %v679_v32  ;;  %v809_v37 = vadd.f32 %v1659_v10, %v680_v29  ;;  %v810_v46 = vadd.f32 %v1659_v10, %v681_v38 }
 0x106   : > { %v811_v47 = vadd.f32 %v1659_v10, %v682_v39  ;;  %v812_v44 = vadd.f32 %v1659_v10, %v683_v36  ;;  %v813_v41 = vadd.f32 %v1659_v10, %v684_v33  ;;  %v814_v50 = vadd.f32 %v1659_v10, %v685_v42 }
 0x107   : > { %v935_v51 = vmul.f32 %v807_v43, %v292_v55  ;;  %v936_v48 = vmul.f32 %v808_v40, %v293_v56  ;;  %v937_v45 = vmul.f32 %v809_v37, %v294_v2  ;;  %v938_v52 = vmul.f32 %v810_v46, %v295_v3 }
 0x108   : > { %v939_v49 = vmul.f32 %v811_v47, %v296_v0  ;;  %v940_v54 = vmul.f32 %v812_v44, %v297_v4  ;;  %v941_v58 = vmul.f32 %v813_v41, %v298_v1  ;;  %v942_v59 = vmul.f32 %v814_v50, %v299_v14  ;;  %v305_v0 = vld [vmem:[%s1641_s26 + $0x3e8] sm:$0xff] }
 0x109   : > { %v1064_v55 = vadd.f32 %v1661_v11, %v935_v51  ;;  %v1065_v56 = vadd.f32 %v1661_v11, %v936_v48  ;;  %v1066_v2 = vadd.f32 %v1661_v11, %v937_v45  ;;  %v1067_v3 = vadd.f32 %v1661_v11, %v938_v52 }
 0x10a   : > { %v1068_v7 = vadd.f32 %v1661_v11, %v939_v49  ;;  %v1069_v4 = vadd.f32 %v1661_v11, %v940_v54  ;;  %v1070_v1 = vadd.f32 %v1661_v11, %v941_v58  ;;  %v1071_v14 = vadd.f32 %v1661_v11, %v942_v59 }
 0x10b   : > { %1192 = vst [vmem:[%s1705_s20 + $0x380] sm:$0xff] %v1064_v55  ;;  %1193 = vst [vmem:[%s1705_s20 + $0x388] sm:$0xff] %v1065_v56  ;;  %v429_v15 = vmul.f32 %v1655_v8, %v300_v53  ;;  %v430_v12 = vmul.f32 %v1655_v8, %v301_v57  ;;  %v431_v5 = vmul.f32 %v1655_v8, %v302_v62 }
 0x10c   : > { %1194 = vst [vmem:[%s1705_s20 + $0x390] sm:$0xff] %v1066_v2  ;;  %1195 = vst [vmem:[%s1705_s20 + $0x398] sm:$0xff] %v1067_v3  ;;  %v432_v18 = vmul.f32 %v1655_v8, %v303_v63  ;;  %v433_v19 = vmul.f32 %v1655_v8, %v304_v60  ;;  %v434_v16 = vmul.f32 %v1655_v8, %v305_v0 }
 0x10d   : > { %1196 = vst [vmem:[%s1705_s20 + $0x3a0] sm:$0xff] %v1068_v7  ;;  %1197 = vst [vmem:[%s1705_s20 + $0x3a8] sm:$0xff] %v1069_v4  ;;  %v435_v13 = vmul.f32 %v1655_v8, %v306_v61  ;;  %v436_v22 = vmul.f32 %v1655_v8, %v307_v6  ;;  %v558_v23 = vadd.f32 %v1657_v9, %v429_v15 }
 0x10e   : > { %1198 = vst [vmem:[%s1705_s20 + $0x3b0] sm:$0xff] %v1070_v1  ;;  %1199 = vst [vmem:[%s1705_s20 + $0x3b8] sm:$0xff] %v1071_v14  ;;  %v559_v20 = vadd.f32 %v1657_v9, %v430_v12  ;;  %v560_v17 = vadd.f32 %v1657_v9, %v431_v5  ;;  %v561_v26 = vadd.f32 %v1657_v9, %v432_v18 }
 0x10f   : > { %v562_v27 = vadd.f32 %v1657_v9, %v433_v19  ;;  %v563_v24 = vadd.f32 %v1657_v9, %v434_v16  ;;  %v564_v21 = vadd.f32 %v1657_v9, %v435_v13  ;;  %v565_v30 = vadd.f32 %v1657_v9, %v436_v22 }
 0x110   : > { %v686_v31 = vmul.f32 %v558_v23, %v300_v53  ;;  %v687_v28 = vmul.f32 %v559_v20, %v301_v57  ;;  %v688_v8 = vmul.f32 %v560_v17, %v302_v62  ;;  %v689_v25 = vmul.f32 %v561_v26, %v303_v63 }
 0x111   : > { %v690_v34 = vmul.f32 %v562_v27, %v304_v60  ;;  %v691_v35 = vmul.f32 %v563_v24, %v305_v0  ;;  %v692_v32 = vmul.f32 %v564_v21, %v306_v61  ;;  %v693_v29 = vmul.f32 %v565_v30, %v307_v6 }
 0x112   : > { %v815_v38 = vadd.f32 %v1659_v10, %v686_v31  ;;  %v816_v39 = vadd.f32 %v1659_v10, %v687_v28  ;;  %v817_v36 = vadd.f32 %v1659_v10, %v688_v8  ;;  %v818_v33 = vadd.f32 %v1659_v10, %v689_v25 }
 0x113   : > { %v819_v9 = vadd.f32 %v1659_v10, %v690_v34  ;;  %v820_v42 = vadd.f32 %v1659_v10, %v691_v35  ;;  %v821_v43 = vadd.f32 %v1659_v10, %v692_v32  ;;  %v822_v40 = vadd.f32 %v1659_v10, %v693_v29 }
 0x114   : > { %v943_v37 = vmul.f32 %v815_v38, %v300_v53  ;;  %v944_v46 = vmul.f32 %v816_v39, %v301_v57  ;;  %v945_v47 = vmul.f32 %v817_v36, %v302_v62  ;;  %v946_v44 = vmul.f32 %v818_v33, %v303_v63 }
 0x115   : > { %v947_v41 = vmul.f32 %v819_v9, %v304_v60  ;;  %v948_v50 = vmul.f32 %v820_v42, %v305_v0  ;;  %v949_v51 = vmul.f32 %v821_v43, %v306_v61  ;;  %v950_v48 = vmul.f32 %v822_v40, %v307_v6 }
 0x116   : > { %v1072_v45 = vadd.f32 %v1661_v11, %v943_v37  ;;  %v1073_v10 = vadd.f32 %v1661_v11, %v944_v46  ;;  %v1074_v52 = vadd.f32 %v1661_v11, %v945_v47  ;;  %v1075_v53 = vadd.f32 %v1661_v11, %v946_v44 }
 0x117   : > { %v1076_v57 = vadd.f32 %v1661_v11, %v947_v41  ;;  %v1077_v49 = vadd.f32 %v1661_v11, %v948_v50  ;;  %v1078_v54 = vadd.f32 %v1661_v11, %v949_v51  ;;  %v1079_v58 = vadd.f32 %v1661_v11, %v950_v48 }
 0x118   : > { %1200 = vst [vmem:[%s1705_s20 + $0x3c0] sm:$0xff] %v1072_v45  ;;  %1201 = vst [vmem:[%s1705_s20 + $0x3c8] sm:$0xff] %v1073_v10 }
 0x119   : > { %1202 = vst [vmem:[%s1705_s20 + $0x3d0] sm:$0xff] %v1074_v52  ;;  %1203 = vst [vmem:[%s1705_s20 + $0x3d8] sm:$0xff] %v1075_v53 }
 0x11a   : > { %1204 = vst [vmem:[%s1705_s20 + $0x3e0] sm:$0xff] %v1076_v57  ;;  %1205 = vst [vmem:[%s1705_s20 + $0x3e8] sm:$0xff] %v1077_v49 }
 0x11b   : > { %1206 = vst [vmem:[%s1705_s20 + $0x3f0] sm:$0xff] %v1078_v54  ;;  %1207 = vst [vmem:[%s1705_s20 + $0x3f8] sm:$0xff] %v1079_v58 }
 0x11c   : > { %1441 = shalt.err (!%p1438_p2)
}
 0x11d   : > { %s1442_s4 = scalar_lea.hbm %s2420_s28, 16384  ;;  %s1446_s26 = scalar_lea.hbm %s2478_s2, 65536 }
 0x11e   : > { %p1443_p3 = scmp.ne.s32.totalorder %s2420_s28, %s1442_s4  ;;  %p1447_p4 = scmp.lt.s32.totalorder %s2420_s28, %s2478_s2 }
 0x11f   : > { %p1448_p6 = scmp.lt.s32.totalorder %s1446_s26, %s1442_s4 }
 0x120   : > { %p1444_p7 = pnand %p1443_p3, %p2493_p13 }
 0x121   : > { %p1449_p11 = por %p1448_p6, %p1447_p4 }
 0x122   : > { %p1445_p5 = pneg %p1444_p7 }
 0x124   : > { %p1450_p12 = pnand %p1449_p11, %p1445_p5 }
 0x126   : > { %1453 = shalt.err (!%p1450_p12)
}
 0x127   : > { %s1503_s7 = smov 128   ;;  %s1504_s8 = smov 8  }
 0x128   : > { %1334 = dma.vmem_to_hbm [thread:$0]  (%p2493_p13), %s2422_s19, 16384, %s2420_s28, %s1209_s24, %s1503_s7, %s1503_s7, %s1504_s8  }
 0x129 PF: > { %p1351_p0 = scmp.ge.s32.totalorder %s1496_s12, 2  ;;  %s1237_s20 = sand.u32 1, %s1484_s9  }
 0x12a   : > { %p2494_p8 = scmp.ne.s32.totalorder %s2486_s22, 0  ;;  %s1238_s17 = scalar_lea.sflag [#allocation4], %s1237_s20 }
 0x12c   : > { %p1345_p9 = pnand %p1351_p0, %p2494_p8 }
 0x12e   : > { %p1346_p10 = pneg %p1345_p9 }
 0x130   : > { %1479 = dma.done.wait (%p1346_p10), %s1238_s17, 16384  }
 0x131   : > { %1481 = vsyncadd (%p1346_p10), %s1238_s17, 4294950912  ;;  %p16_p1 = scmp.ge.s32.totalorder %s1545_s15, 6   ;;  %s2495_s9 = smov %s1488_s10 }
 0x132   : > { %s2496_s10 = smov %s1492_s11  ;;  %s2497_s11 = smov %s1557_s18 }
 0x133   : > { %s2498_s12 = smov %s1545_s15  ;;  %18 = sbr.rel (!%p16_p1) target bundleno = 6 (0x6), region = 78 }
 0x138   :  { %1243 = vsyncpa [#allocation3], 1 }
 0x139   :  { %1245 = vsyncpa [#allocation3 + $0x1], 1 }
 0x13a   :  { %1246 = vsyncpa [#allocation4], 1 }
 0x13b   :  { %1248 = vsyncpa [#allocation4 + $0x1], 1 }
 0x13c   :  { %1249 = vsyncpa [#allocation5], 1 }
 0x13d   :  { %1251 = vsyncpa [#allocation5 + $0x1], 1 }

</bundles_post_ra>
